<compile_context>
chip_gen: v5e
topology: v5e:2x2
jax: 0.10.0
libtpu: 0.0.40
codegen_flags: <defaults>
</compile_context>

<pallas_src>
import functools

import jax
import jax.numpy as jnp
from jax import lax
from jax.experimental import pallas as pl
from jax.experimental.pallas import tpu as pltpu


_INV_SQRT2 = 0.7071067811865476


def _gelu_exact_f32(x):
    # PyTorch F.gelu default: 0.5 * x * (1 + erf(x / sqrt(2))), x is f32 here.
    return 0.5 * x * (1.0 + lax.erf(x * jnp.float32(_INV_SQRT2)))


def masklm_head_kernel(feat_ref, wd_ref, bd_ref, gamma_ref, beta_ref,
                       wout_ref, bout_ref, o_ref, h_ref):
    # feat_ref : (TN, E)      token tile (input dtype, f32 or bf16)
    # wd_ref   : (E, E)       dense weight, pre-transposed (in, out)
    # bd_ref   : (1, E)  f32  dense bias
    # gamma_ref/beta_ref : (1, E) f32   LayerNorm affine
    # wout_ref : (E, TV)      output-projection weight tile, pre-transposed
    # bout_ref : (1, TV) f32  output bias tile
    # o_ref    : (TN, TV)     logits tile
    # h_ref    : (TN, E) f32  VMEM scratch holding dense+GELU+LN activations,
    #                         computed once per token tile (j == 0), reused
    #                         for every vocab tile j.

    @pl.when(pl.program_id(1) == 0)
    def _compute_hidden():
        x = feat_ref[...]
        # dense: x @ Wd_t + bd  (MXU, f32 accumulation)
        h = jnp.dot(x, wd_ref[...], preferred_element_type=jnp.float32)
        h = h + bd_ref[...]
        # exact GELU (EUP erf) in f32
        h = _gelu_exact_f32(h)
        # LayerNorm over last dim, eps = 1e-5, affine
        mean = jnp.mean(h, axis=-1, keepdims=True)
        centered = h - mean
        var = jnp.mean(centered * centered, axis=-1, keepdims=True)
        inv = lax.rsqrt(var + 1e-5)
        h_ref[...] = centered * inv * gamma_ref[...] + beta_ref[...]

    # output projection for this vocab tile: h @ Wout_t[:, j] + bout[j]
    h = h_ref[...].astype(wout_ref.dtype)   # no-op for f32 weights, bf16 path otherwise
    out = jnp.dot(h, wout_ref[...], preferred_element_type=jnp.float32)
    out = out + bout_ref[...]
    o_ref[...] = out.astype(o_ref.dtype)


@functools.partial(jax.jit, static_argnames=("tile_n", "tile_v"))
def masklm_head(features, params, tile_n=128, tile_v=512):
    """features: (N, E) flattened (masked-)tokens. Returns (N, V) logits.

    tile_n: token rows per step (sweep 128/256/512; multiple of 8 for f32,
            16 for bf16; 256 fills a full v6e/v7x MXU pass).
    tile_v: vocab columns per step (multiple of 128, ideally 512-2048).
    """
    wd_t, bd, gamma, beta, wout_t, bout = params
    N, E = features.shape
    V = wout_t.shape[1]

    # Pad token and vocab dims up to tile multiples (slice back at the end).
    n_pad = (-N) % tile_n
    v_pad = (-V) % tile_v
    if n_pad:
        features = jnp.pad(features, ((0, n_pad), (0, 0)))
    if v_pad:
        wout_t = jnp.pad(wout_t, ((0, 0), (0, v_pad)))
        bout = jnp.pad(bout, ((0, 0), (0, v_pad)))
    Np, Vp = N + n_pad, V + v_pad

    grid = (Np // tile_n, Vp // tile_v)

    # Explicit VMEM budget (BlockSpec double-buffers each operand) + LN scratch.
    fsz = features.dtype.itemsize
    wsz = wd_t.dtype.itemsize
    osz = features.dtype.itemsize
    per_buf = (tile_n * E * fsz            # features tile
               + E * E * wsz               # Wd (grid-invariant, still 2 bufs)
               + 3 * E * 4                 # bd / gamma / beta (f32)
               + E * tile_v * wsz          # Wout tile
               + tile_v * 4                # bout tile
               + tile_n * tile_v * osz)    # output tile
    vmem_bytes = 2 * per_buf + tile_n * E * 4          # + f32 hidden scratch
    vmem_limit = int(min(max(2 * vmem_bytes, 32 << 20), 64 << 20))  # v7x-safe cap

    cost = pl.CostEstimate(
        flops=2 * Np * E * E + 2 * Np * E * Vp,
        transcendentals=Np * E,                         # erf in GELU
        bytes_accessed=(Np * E * fsz + E * E * wsz + 3 * E * 4
                        + E * Vp * wsz + Vp * 4 + Np * Vp * osz),
    )

    out = pl.pallas_call(
        masklm_head_kernel,
        out_shape=jax.ShapeDtypeStruct((Np, Vp), features.dtype),
        grid_spec=pltpu.PrefetchScalarGridSpec(
            num_scalar_prefetch=0,
            grid=grid,
            in_specs=[
                pl.BlockSpec((tile_n, E), lambda i, j: (i, 0)),    # features tile
                pl.BlockSpec((E, E), lambda i, j: (0, 0)),         # Wd_t (full)
                pl.BlockSpec((1, E), lambda i, j: (0, 0)),         # bd
                pl.BlockSpec((1, E), lambda i, j: (0, 0)),         # gamma
                pl.BlockSpec((1, E), lambda i, j: (0, 0)),         # beta
                pl.BlockSpec((E, tile_v), lambda i, j: (0, j)),    # Wout_t tile
                pl.BlockSpec((1, tile_v), lambda i, j: (0, j)),    # bout tile
            ],
            out_specs=pl.BlockSpec((tile_n, tile_v), lambda i, j: (i, j)),
            scratch_shapes=[pltpu.VMEM((tile_n, E), jnp.float32)],  # LN activations
        ),
        compiler_params=pltpu.CompilerParams(
            dimension_semantics=("parallel", "arbitrary"),
            vmem_limit_bytes=vmem_limit),
        cost_estimate=cost,
    )(features, wd_t, bd, gamma, beta, wout_t, bout)

    return out[:N, :V]


def init_params(key, embed_dim, output_dim, weight_dtype=jnp.float32):
    """Deterministic synthetic parameters matching the nn.Module shapes.

    Weights are pre-transposed to (in, out) so the kernel does plain row-major
    matmuls. Pass weight_dtype=jnp.bfloat16 for peak MXU rate in production.
    """
    k1, k2, k3 = jax.random.split(key, 3)
    # nn.Linear(embed_dim, embed_dim): weight (E, E), bias (E,)
    wd = (jax.random.normal(k1, (embed_dim, embed_dim), jnp.float32) * 0.02)
    bd = (jax.random.normal(k2, (1, embed_dim), jnp.float32) * 0.02)
    # LayerNorm affine: gamma=1, beta=0 (PyTorch init)
    gamma = jnp.ones((1, embed_dim), jnp.float32)
    beta = jnp.zeros((1, embed_dim), jnp.float32)
    # shared output weight: nn.Linear(E, V, bias=False).weight -> (V, E)
    wout = (jax.random.normal(k3, (output_dim, embed_dim), jnp.float32) * 0.02)
    # bias parameter: zeros(V)
    bout = jnp.zeros((1, output_dim), jnp.float32)
    return (wd.T.astype(weight_dtype), bd, gamma, beta,
            wout.T.astype(weight_dtype), bout)


def reference(features, params):
    wd_t, bd, gamma, beta, wout_t, bout = params
    x = features.astype(jnp.float32) @ wd_t.astype(jnp.float32) + bd
    x = 0.5 * x * (1.0 + lax.erf(x * jnp.float32(_INV_SQRT2)))
    mu = x.mean(-1, keepdims=True)
    var = ((x - mu) ** 2).mean(-1, keepdims=True)
    x = (x - mu) * lax.rsqrt(var + 1e-5) * gamma + beta
    return x @ wout_t.astype(jnp.float32) + bout


if __name__ == "__main__":
    key = jax.random.PRNGKey(0)
    batch, seq, embed_dim, output_dim = 2, 8, 128, 384

    kf, kp = jax.random.split(key)
    # features as the PyTorch module would see them: (batch, seq, embed_dim)
    features_bse = jax.random.normal(kf, (batch, seq, embed_dim), jnp.float32)
    # masked_tokens selection would happen here (wrapper-side gather); we use
    # all tokens, flattened token-major to (N, E).
    features = features_bse.reshape(batch * seq, embed_dim)

    params = init_params(kp, embed_dim, output_dim)

    # tile_v=128 so the small demo still exercises the V grid axis + scratch reuse.
    out = masklm_head(features, params, tile_n=128, tile_v=128)
    out = jax.block_until_ready(out)

    ref = reference(features, params)
    assert out.shape == (batch * seq, output_dim), out.shape
    max_err = jnp.max(jnp.abs(out - ref))
    assert jnp.allclose(out, ref, atol=2e-3, rtol=2e-3), f"max err {max_err}"

    print("KERNEL_OK")
</pallas_src>

<mosaic_0001>
module attributes {stable_mosaic.version = 11 : i64} {
  func.func @masklm_head_kernel(%arg0: i32, %arg1: i32, %arg2: memref<128x128xf32, #tpu.memory_space<vmem>>, %arg3: memref<128x128xf32, #tpu.memory_space<vmem>>, %arg4: memref<1x128xf32, #tpu.memory_space<vmem>>, %arg5: memref<1x128xf32, #tpu.memory_space<vmem>>, %arg6: memref<1x128xf32, #tpu.memory_space<vmem>>, %arg7: memref<128x128xf32, #tpu.memory_space<vmem>>, %arg8: memref<1x128xf32, #tpu.memory_space<vmem>>, %arg9: memref<128x128xf32, #tpu.memory_space<vmem>>, %arg10: memref<128x128xf32, #tpu.memory_space<vmem>>) attributes {dimension_semantics = [#tpu.dimension_semantics<parallel>, #tpu.dimension_semantics<arbitrary>], iteration_bounds = array<i64: 1, 3>, scalar_prefetch = 0 : i64, scratch_operands = 1 : i64, tpu.core_type = #tpu.core_type<tc>, window_params = [{transform_indices = @transform_0, window_bounds = array<i64: 128, 128>}, {pipeline_mode = #tpu.pipeline_mode<synchronous>, transform_indices = @transform_1, window_bounds = array<i64: 128, 128>}, {pipeline_mode = #tpu.pipeline_mode<synchronous>, transform_indices = @transform_2, window_bounds = array<i64: 1, 128>}, {pipeline_mode = #tpu.pipeline_mode<synchronous>, transform_indices = @transform_3, window_bounds = array<i64: 1, 128>}, {pipeline_mode = #tpu.pipeline_mode<synchronous>, transform_indices = @transform_4, window_bounds = array<i64: 1, 128>}, {transform_indices = @transform_5, window_bounds = array<i64: 128, 128>}, {transform_indices = @transform_6, window_bounds = array<i64: 1, 128>}, {transform_indices = @transform_7, window_bounds = array<i64: 128, 128>}]} {
    %c0_i32 = arith.constant 0 : i32
    %0 = arith.cmpi eq, %arg1, %c0_i32 : i32
    %1 = arith.extui %0 : i1 to i32
    %c0_i32_0 = arith.constant 0 : i32
    %2 = arith.cmpi ne, %1, %c0_i32_0 : i32
    scf.if %2 {
      %c0_8 = arith.constant 0 : index
      %c0_9 = arith.constant 0 : index
      %10 = vector.load %arg2[%c0_8, %c0_9] : memref<128x128xf32, #tpu.memory_space<vmem>>, vector<128x128xf32>
      %c0_10 = arith.constant 0 : index
      %c0_11 = arith.constant 0 : index
      %11 = vector.load %arg3[%c0_10, %c0_11] : memref<128x128xf32, #tpu.memory_space<vmem>>, vector<128x128xf32>
      %cst_12 = arith.constant dense<0.000000e+00> : vector<128x128xf32>
      %12 = tpu.matmul %10, %11, %cst_12 {dimension_numbers = #tpu.dot_dimension_numbers<[1], [0], [0], [1], [0, 0, 1, 1], [], []>} : vector<128x128xf32>, vector<128x128xf32>, vector<128x128xf32> -> vector<128x128xf32>
      %c0_13 = arith.constant 0 : index
      %c0_14 = arith.constant 0 : index
      %13 = vector.load %arg4[%c0_13, %c0_14] : memref<1x128xf32, #tpu.memory_space<vmem>>, vector<1x128xf32>
      %14 = vector.broadcast %13 : vector<1x128xf32> to vector<128x128xf32>
      %15 = arith.addf %12, %14 : vector<128x128xf32>
      %cst_15 = arith.constant 5.000000e-01 : f32
      %16 = vector.broadcast %cst_15 : f32 to vector<128x128xf32>
      %17 = arith.mulf %16, %15 : vector<128x128xf32>
      %cst_16 = arith.constant 0.707106769 : f32
      %18 = vector.broadcast %cst_16 : f32 to vector<128x128xf32>
      %19 = arith.mulf %15, %18 : vector<128x128xf32>
      %20 = math.erf %19 : vector<128x128xf32>
      %cst_17 = arith.constant 1.000000e+00 : f32
      %21 = vector.broadcast %cst_17 : f32 to vector<128x128xf32>
      %22 = arith.addf %21, %20 : vector<128x128xf32>
      %23 = arith.mulf %17, %22 : vector<128x128xf32>
      %cst_18 = arith.constant dense<0.000000e+00> : vector<128xf32>
      %24 = vector.multi_reduction <add>, %23, %cst_18 [1] : vector<128x128xf32> to vector<128xf32>
      %25 = vector.shape_cast %24 : vector<128xf32> to vector<128x1xf32>
      %cst_19 = arith.constant 1.280000e+02 : f32
      %26 = vector.broadcast %cst_19 : f32 to vector<128x1xf32>
      %27 = arith.divf %25, %26 : vector<128x1xf32>
      %28 = vector.broadcast %27 : vector<128x1xf32> to vector<128x128xf32>
      %29 = arith.subf %23, %28 : vector<128x128xf32>
      %30 = arith.mulf %29, %29 : vector<128x128xf32>
      %cst_20 = arith.constant dense<0.000000e+00> : vector<128xf32>
      %31 = vector.multi_reduction <add>, %30, %cst_20 [1] : vector<128x128xf32> to vector<128xf32>
      %32 = vector.shape_cast %31 : vector<128xf32> to vector<128x1xf32>
      %cst_21 = arith.constant 1.280000e+02 : f32
      %33 = vector.broadcast %cst_21 : f32 to vector<128x1xf32>
      %34 = arith.divf %32, %33 : vector<128x1xf32>
      %cst_22 = arith.constant 9.99999974E-6 : f32
      %35 = vector.broadcast %cst_22 : f32 to vector<128x1xf32>
      %36 = arith.addf %34, %35 : vector<128x1xf32>
      %37 = math.rsqrt %36 : vector<128x1xf32>
      %38 = vector.broadcast %37 : vector<128x1xf32> to vector<128x128xf32>
      %39 = arith.mulf %29, %38 : vector<128x128xf32>
      %c0_23 = arith.constant 0 : index
      %c0_24 = arith.constant 0 : index
      %40 = vector.load %arg5[%c0_23, %c0_24] : memref<1x128xf32, #tpu.memory_space<vmem>>, vector<1x128xf32>
      %41 = vector.broadcast %40 : vector<1x128xf32> to vector<128x128xf32>
      %42 = arith.mulf %39, %41 : vector<128x128xf32>
      %c0_25 = arith.constant 0 : index
      %c0_26 = arith.constant 0 : index
      %43 = vector.load %arg6[%c0_25, %c0_26] : memref<1x128xf32, #tpu.memory_space<vmem>>, vector<1x128xf32>
      %44 = vector.broadcast %43 : vector<1x128xf32> to vector<128x128xf32>
      %45 = arith.addf %42, %44 : vector<128x128xf32>
      %c0_27 = arith.constant 0 : index
      %c0_28 = arith.constant 0 : index
      %46 = vector.load %arg10[%c0_27, %c0_28] : memref<128x128xf32, #tpu.memory_space<vmem>>, vector<128x128xf32>
      tpu.vector_store %arg10[%c0_27, %c0_28], %45 {strides = array<i32>} : memref<128x128xf32, #tpu.memory_space<vmem>>, vector<128x128xf32>,
    } else {
    }
    %c0 = arith.constant 0 : index
    %c0_1 = arith.constant 0 : index
    %3 = vector.load %arg10[%c0, %c0_1] : memref<128x128xf32, #tpu.memory_space<vmem>>, vector<128x128xf32>
    %c0_2 = arith.constant 0 : index
    %c0_3 = arith.constant 0 : index
    %4 = vector.load %arg7[%c0_2, %c0_3] : memref<128x128xf32, #tpu.memory_space<vmem>>, vector<128x128xf32>
    %cst = arith.constant dense<0.000000e+00> : vector<128x128xf32>
    %5 = tpu.matmul %3, %4, %cst {dimension_numbers = #tpu.dot_dimension_numbers<[1], [0], [0], [1], [0, 0, 1, 1], [], []>} : vector<128x128xf32>, vector<128x128xf32>, vector<128x128xf32> -> vector<128x128xf32>
    %c0_4 = arith.constant 0 : index
    %c0_5 = arith.constant 0 : index
    %6 = vector.load %arg8[%c0_4, %c0_5] : memref<1x128xf32, #tpu.memory_space<vmem>>, vector<1x128xf32>
    %7 = vector.broadcast %6 : vector<1x128xf32> to vector<128x128xf32>
    %8 = arith.addf %5, %7 : vector<128x128xf32>
    %c0_6 = arith.constant 0 : index
    %c0_7 = arith.constant 0 : index
    %9 = vector.load %arg9[%c0_6, %c0_7] : memref<128x128xf32, #tpu.memory_space<vmem>>, vector<128x128xf32>
    tpu.vector_store %arg9[%c0_6, %c0_7], %8 {strides = array<i32>} : memref<128x128xf32, #tpu.memory_space<vmem>>, vector<128x128xf32>,
    return
  }
  func.func @transform_0(%arg0: i32, %arg1: i32) -> (i32, i32) {
    %c0_i32 = arith.constant 0 : i32
    %c0_i32_0 = arith.constant 0 : i32
    return %arg0, %c0_i32 : i32, i32
  }
  func.func @transform_1(%arg0: i32, %arg1: i32) -> (i32, i32) {
    %c0_i32 = arith.constant 0 : i32
    %c0_i32_0 = arith.constant 0 : i32
    %c0_i32_1 = arith.constant 0 : i32
    return %c0_i32, %c0_i32_0 : i32, i32
  }
  func.func @transform_2(%arg0: i32, %arg1: i32) -> (i32, i32) {
    %c0_i32 = arith.constant 0 : i32
    %c0_i32_0 = arith.constant 0 : i32
    %c0_i32_1 = arith.constant 0 : i32
    return %c0_i32, %c0_i32_0 : i32, i32
  }
  func.func @transform_3(%arg0: i32, %arg1: i32) -> (i32, i32) {
    %c0_i32 = arith.constant 0 : i32
    %c0_i32_0 = arith.constant 0 : i32
    %c0_i32_1 = arith.constant 0 : i32
    return %c0_i32, %c0_i32_0 : i32, i32
  }
  func.func @transform_4(%arg0: i32, %arg1: i32) -> (i32, i32) {
    %c0_i32 = arith.constant 0 : i32
    %c0_i32_0 = arith.constant 0 : i32
    %c0_i32_1 = arith.constant 0 : i32
    return %c0_i32, %c0_i32_0 : i32, i32
  }
  func.func @transform_5(%arg0: i32, %arg1: i32) -> (i32, i32) {
    %c0_i32 = arith.constant 0 : i32
    %c0_i32_0 = arith.constant 0 : i32
    return %c0_i32, %arg1 : i32, i32
  }
  func.func @transform_6(%arg0: i32, %arg1: i32) -> (i32, i32) {
    %c0_i32 = arith.constant 0 : i32
    %c0_i32_0 = arith.constant 0 : i32
    return %c0_i32, %arg1 : i32, i32
  }
  func.func @transform_7(%arg0: i32, %arg1: i32) -> (i32, i32) {
    %c0_i32 = arith.constant 0 : i32
    return %arg0, %arg1 : i32, i32
  }
}

</mosaic_0001>

<bundles_post_ra>
// kernel: masklm_head.1
= control target key start
LH: loop header
LB: loop body
LE: loop exit
PB: predicated region body
PF: predicated region fallthrough
CT: control target
= control target key end

     0   :  { %12 = vsyncpa [#allocation4], 0  ;;  %s3333_s0 = inlined_call_operand.vmem [shape: f32[128,128], index: 0, kind: input, shape index: {}]   ;;  %s3334_s1 = inlined_call_operand.vmem [shape: f32[128,128], index: 1, kind: input, shape index: {}]   ;;  %s3335_s2 = inlined_call_operand.vmem [shape: f32[1,128], index: 2, kind: input, shape index: {}]   ;;  %s3336_s3 = inlined_call_operand.vmem [shape: f32[1,128], index: 3, kind: input, shape index: {}]   ;;  %s3337_s4 = inlined_call_operand.vmem [shape: f32[1,128], index: 4, kind: input, shape index: {}]   ;;  %s3338_s5 = inlined_call_operand.hbm [shape: f32[128,384], index: 5, kind: input, shape index: {}]   ;;  %s3339_s6 = inlined_call_operand.vmem [shape: f32[1,384], index: 6, kind: input, shape index: {}]   ;;  %s3340_s7 = inlined_call_operand.vmem [shape: f32[128,384], index: 7, kind: output, shape index: {}]  }
   0x1   :  { %14 = vsyncpa [#allocation4 + $0x1], 0  ;;  %s2237_s24 = smov 0   ;;  %s2239_s25 = smov 0  }
   0x2   :  { %s2241_s26 = smov 0   ;;  %s2243_s27 = smov 0  }
   0x3   :  { %s2245_s28 = smov 0   ;;  %s2247_s29 = smov 0  }
   0x4 LB: > { %s1855_s30 = sadd.s32 4294967295, %s2191_s29   ;;  %s29_s8 = sadd.s32 1, %s2187_s28  ;;  %s2191_s29 = sphi %s2247_s29, %s20_s29   ;;  %s2187_s28 = sphi %s2245_s28, %s3395_s28   ;;  %s2183_s27 = sphi %s2243_s27, %s3394_s27   ;;  %s2179_s26 = sphi %s2241_s26, %s3393_s26   ;;  %s2175_s25 = sphi %s2239_s25, %s3392_s25   ;;  %s2171_s24 = sphi %s2237_s24, %s3391_s24  }
   0x5   : > { %p30_p0 = scmp.ge.s32.totalorder %s29_s8, 3  ;;  %s149_s9 = sadd.s32 1, %s2179_s26 }
   0x6   : > { %p156_p1 = scmp.ne.s32.totalorder %s2179_s26, %s2175_s25  ;;  %p157_p2 = scmp.eq.s32.totalorder %s2191_s29, 0 }
   0x7   : > { %s3397_s8 = smov (%p30_p0, %s29_s8), 0  ;;  %p162_p4 = scmp.ne.s32.totalorder %s2175_s25, %s2171_s24 }
   0x8   : > { %p2273_p3 = por %p157_p2, %p156_p1  ;;  %s146_s11 = ssub.s32 %s2187_s28, %s3397_s8 }
   0x9   : > { %p163_p5 = scmp.eq.s32.totalorder %s1855_s30, 0  ;;  %p147_p6 = scmp.eq.s32.totalorder %s146_s11, 0 }
   0xa   : > { %p214_p7 = scmp.eq.s32.totalorder %s1855_s30, 2  ;;  %p1988_p10 = scmp.lt.s32.totalorder %s2191_s29, 3 }
   0xb   : > { %p2280_p8 = por %p163_p5, %p162_p4  ;;  %s261_s15 = sand.u32 1, %s2179_s26  }
   0xc   : > { %s2285_s13 = scalar_select %p147_p6, %s2179_s26, %s149_s9  }
   0xd   : > { %p2287_p9 = por %p214_p7, %p156_p1  ;;  %s1861_s16 = sshll.u32 %s2187_s28, 3 }
   0xe   : > { %s1860_s17 = sshll.u32 %s261_s15, 7  ;;  %s269_s20 = scalar_lea.hbm %s3338_s5, %s1861_s16 }
   0xf   : > { %s270_s21 = sshll.u32 %s269_s20, 4  ;;  %s265_s22 = scalar_lea.vmem [#allocation3], %s1860_s17  ;;  %s271_s21 = int_to_ptr.hbm [resolvable:$true] %s270_s21 }
  0x10   : > { %s272_s23 = sshll.u32 %s265_s22, 4  ;;  %p1985_p11 = pnand %p1988_p10, %p2273_p3  ;;  %s273_s23 = int_to_ptr.vmem [resolvable:$true] %s272_s23 }
  0x11   : > { %p1862_p12 = scmp.ge.s32.totalorder %s2191_s29, 1  ;;  %s262_s24 = scalar_lea.sflag [#allocation4], %s261_s15 }
  0x12   : > { %s2193_s30 = smov 384   ;;  %s2194_s9 = smov 128  }
  0x13   : > { %s2195_s11 = smov 8   ;;  %p286_p13 = scmp.lt.s32.totalorder %s2191_s29, 4 }
  0x14   : > { %1987 = dma.hbm_to_vmem [thread:$0]  (!%p1985_p11), %s271_s21, 2048, %s273_s23, %s262_s24, %s2193_s30, %s2194_s9, %s2195_s11  }
  0x15   : > { %p287_p0 = pnand %p1862_p12, %p286_p13 }
  0x16   : > { %s292_s18 = sand.u32 (!%p287_p0), 1, %s2175_s25  }
  0x17   : > { %290 = sbr.rel (%p287_p0) target bundleno = 862 (0x35e), region = 48  ;;  %s1863_s16 = sshll.u32 (!%p287_p0), %s292_s18, 7 }
  0x18   : > { %s293_s19 = scalar_lea.sflag (!%p287_p0), [#allocation4], %s292_s18  ;;  %s2302_s17 = scalar_lea.vmem (!%p287_p0), [#allocation3], %s1863_s16 }
  0x1c   : > { %2166 = dma.done.wait (%p2280_p8), %s293_s19, 2048  }
  0x1d   : > { %2168 = vsyncadd (%p2280_p8), %s293_s19, 4294965248  ;;  %p341_p1 = scmp.lt.s32.totalorder %s2183_s27, 2  ;;  %s2316_s22 = scalar_lea.vmem [#allocation5], %s1863_s16 }
  0x1e   : > { %p1865_p2 = scmp.ne.s32.totalorder %s2183_s27, 0 }
  0x1f   : > { %s2310_s10 = scalar_select %p341_p1, %s2183_s27, 2 }
  0x20   : > { %348 = sbr.rel (%p1865_p2) target bundleno = 662 (0x296), region = 56 }
  0x21   : > { %s343_s21 = scalar_lea.vmem %s3339_s6, %s2310_s10 }
  0x25   : > { %v380_v0 = vld [vmem:[%s3334_s1 + $0x78] sm:$0xff]  ;;  %v379_v1 = vld [vmem:[%s3334_s1 + $0x70] sm:$0xff]  ;;  %v378_v2 = vld [vmem:[%s3334_s1 + $0x68] sm:$0xff] }
  0x26   : > { %385 = vmatpush.msra.mxu0 %v380_v0  ;;  %1886 = vmatpush.msra.mxu1 %v380_v0  ;;  %v377_v3 = vld [vmem:[%s3334_s1 + $0x60] sm:$0xff]  ;;  %v376_v4 = vld [vmem:[%s3334_s1 + $0x58] sm:$0xff]  ;;  %v375_v5 = vld [vmem:[%s3334_s1 + $0x50] sm:$0xff] }
  0x27   : > { %1887 = vmatpush.msra.mxu2 %v380_v0  ;;  %1888 = vmatpush.msra.mxu3 %v380_v0  ;;  %v374_v6 = vld [vmem:[%s3334_s1 + $0x48] sm:$0xff]  ;;  %v373_v7 = vld [vmem:[%s3334_s1 + $0x40] sm:$0xff]  ;;  %v372_v8 = vld [vmem:[%s3334_s1 + $0x38] sm:$0xff] }
  0x28   : > { %386 = vmatpush.msra.mxu0 %v379_v1  ;;  %1889 = vmatpush.msra.mxu1 %v379_v1  ;;  %v371_v9 = vld [vmem:[%s3334_s1 + $0x30] sm:$0xff]  ;;  %v370_v10 = vld [vmem:[%s3334_s1 + $0x28] sm:$0xff]  ;;  %v369_v11 = vld [vmem:[%s3334_s1 + $0x20] sm:$0xff] }
  0x29   : > { %1890 = vmatpush.msra.mxu2 %v379_v1  ;;  %1891 = vmatpush.msra.mxu3 %v379_v1  ;;  %v368_v12 = vld [vmem:[%s3334_s1 + $0x18] sm:$0xff]  ;;  %v367_v13 = vld [vmem:[%s3334_s1 + $0x10] sm:$0xff]  ;;  %v366_v14 = vld [vmem:[%s3334_s1 + $0x8] sm:$0xff] }
  0x2a   : > { %387 = vmatpush.msra.mxu0 %v378_v2  ;;  %1892 = vmatpush.msra.mxu1 %v378_v2  ;;  %v365_v15 = vld [vmem:[%s3334_s1] sm:$0xff]  ;;  %v350_v20 = vld [vmem:[%s3333_s0 + $0x8] sm:$0xff]  ;;  %v351_v24 = vld [vmem:[%s3333_s0 + $0x10] sm:$0xff] }
  0x2b   : > { %1893 = vmatpush.msra.mxu2 %v378_v2  ;;  %1894 = vmatpush.msra.mxu3 %v378_v2  ;;  %v349_v16 = vld [vmem:[%s3333_s0] sm:$0xff]  ;;  %v354_v21 = vld [vmem:[%s3333_s0 + $0x28] sm:$0xff]  ;;  %v355_v25 = vld [vmem:[%s3333_s0 + $0x30] sm:$0xff] }
  0x2c   : > { %388 = vmatpush.msra.mxu0 %v377_v3  ;;  %1895 = vmatpush.msra.mxu1 %v377_v3  ;;  %v353_v17 = vld [vmem:[%s3333_s0 + $0x20] sm:$0xff]  ;;  %v358_v22 = vld [vmem:[%s3333_s0 + $0x48] sm:$0xff]  ;;  %v359_v26 = vld [vmem:[%s3333_s0 + $0x50] sm:$0xff] }
  0x2d   : > { %1896 = vmatpush.msra.mxu2 %v377_v3  ;;  %1897 = vmatpush.msra.mxu3 %v377_v3  ;;  %v357_v18 = vld [vmem:[%s3333_s0 + $0x40] sm:$0xff]  ;;  %v362_v23 = vld [vmem:[%s3333_s0 + $0x68] sm:$0xff]  ;;  %v363_v27 = vld [vmem:[%s3333_s0 + $0x70] sm:$0xff] }
  0x2e   : > { %389 = vmatpush.msra.mxu0 %v376_v4  ;;  %1898 = vmatpush.msra.mxu1 %v376_v4  ;;  %v361_v19 = vld [vmem:[%s3333_s0 + $0x60] sm:$0xff]  ;;  %v352_v28 = vld [vmem:[%s3333_s0 + $0x18] sm:$0xff] }
  0x2f   : > { %1899 = vmatpush.msra.mxu2 %v376_v4  ;;  %1900 = vmatpush.msra.mxu3 %v376_v4  ;;  %v356_v29 = vld [vmem:[%s3333_s0 + $0x38] sm:$0xff]  ;;  %v2418_v32 = vld [vmem:[%s3335_s2] ss:$0 sm:$0xff] }
  0x30   : > { %390 = vmatpush.msra.mxu0 %v375_v5  ;;  %1901 = vmatpush.msra.mxu1 %v375_v5  ;;  %v360_v30 = vld [vmem:[%s3333_s0 + $0x58] sm:$0xff] }
  0x31   : > { %1902 = vmatpush.msra.mxu2 %v375_v5  ;;  %1903 = vmatpush.msra.mxu3 %v375_v5  ;;  %v364_v31 = vld [vmem:[%s3333_s0 + $0x78] sm:$0xff] }
  0x32   : > { %391 = vmatpush.msra.mxu0 %v374_v6  ;;  %1904 = vmatpush.msra.mxu1 %v374_v6 }
  0x33   : > { %1905 = vmatpush.msra.mxu2 %v374_v6  ;;  %1906 = vmatpush.msra.mxu3 %v374_v6 }
  0x34   : > { %392 = vmatpush.msra.mxu0 %v373_v7  ;;  %1907 = vmatpush.msra.mxu1 %v373_v7 }
  0x35   : > { %1908 = vmatpush.msra.mxu2 %v373_v7  ;;  %1909 = vmatpush.msra.mxu3 %v373_v7 }
  0x36   : > { %393 = vmatpush.msra.mxu0 %v372_v8  ;;  %1910 = vmatpush.msra.mxu1 %v372_v8 }
  0x37   : > { %1911 = vmatpush.msra.mxu2 %v372_v8  ;;  %1912 = vmatpush.msra.mxu3 %v372_v8 }
  0x38   : > { %394 = vmatpush.msra.mxu0 %v371_v9  ;;  %1913 = vmatpush.msra.mxu1 %v371_v9 }
  0x39   : > { %1914 = vmatpush.msra.mxu2 %v371_v9  ;;  %1915 = vmatpush.msra.mxu3 %v371_v9 }
  0x3a   : > { %395 = vmatpush.msra.mxu0 %v370_v10  ;;  %1916 = vmatpush.msra.mxu1 %v370_v10 }
  0x3b   : > { %1917 = vmatpush.msra.mxu2 %v370_v10  ;;  %1918 = vmatpush.msra.mxu3 %v370_v10 }
  0x3c   : > { %396 = vmatpush.msra.mxu0 %v369_v11  ;;  %1919 = vmatpush.msra.mxu1 %v369_v11 }
  0x3d   : > { %1920 = vmatpush.msra.mxu2 %v369_v11  ;;  %1921 = vmatpush.msra.mxu3 %v369_v11 }
  0x3e   : > { %397 = vmatpush.msra.mxu0 %v368_v12  ;;  %1922 = vmatpush.msra.mxu1 %v368_v12 }
  0x3f   : > { %1923 = vmatpush.msra.mxu2 %v368_v12  ;;  %1924 = vmatpush.msra.mxu3 %v368_v12 }
  0x40   : > { %398 = vmatpush.msra.mxu0 %v367_v13  ;;  %1925 = vmatpush.msra.mxu1 %v367_v13 }
  0x41   : > { %1926 = vmatpush.msra.mxu2 %v367_v13  ;;  %1927 = vmatpush.msra.mxu3 %v367_v13 }
  0x42   : > { %399 = vmatpush.msra.mxu0 %v366_v14  ;;  %1928 = vmatpush.msra.mxu1 %v366_v14 }
  0x43   : > { %1929 = vmatpush.msra.mxu2 %v366_v14  ;;  %1930 = vmatpush.msra.mxu3 %v366_v14 }
  0x44   : > { %400 = vmatpush.msra.mxu0 %v365_v15  ;;  %1931 = vmatpush.msra.mxu1 %v365_v15 }
  0x45   : > { %1932 = vmatpush.msra.mxu2 %v365_v15  ;;  %1933 = vmatpush.msra.mxu3 %v365_v15 }
  0x46   : > { %401 = vmatmul.f32.vlgmr.msra.gmra.mxu0 %v349_v16  ;;  %413 = vmatmul.f32.vlgmr.msra.gmra.mxu1 %v353_v17 }
  0x47   : > { %425 = vmatmul.f32.vlgmr.msra.gmra.mxu2 %v357_v18  ;;  %437 = vmatmul.f32.vlgmr.msra.gmra.mxu3 %v361_v19 }
  0x4e   : > { %404 = vmatmul.f32.gmra.mxu0 %v350_v20  ;;  %416 = vmatmul.f32.gmra.mxu1 %v354_v21 }
  0x4f   : > { %428 = vmatmul.f32.gmra.mxu2 %v358_v22  ;;  %440 = vmatmul.f32.gmra.mxu3 %v362_v23 }
  0x56   : > { %407 = vmatmul.f32.gmra.mxu0 %v351_v24  ;;  %419 = vmatmul.f32.gmra.mxu1 %v355_v25 }
  0x57   : > { %431 = vmatmul.f32.gmra.mxu2 %v359_v26  ;;  %443 = vmatmul.f32.gmra.mxu3 %v363_v27 }
  0x5e   : > { %410 = vmatmul.f32.gmra.mxu0 %v352_v28  ;;  %422 = vmatmul.f32.gmra.mxu1 %v356_v29 }
  0x5f   : > { %434 = vmatmul.f32.gmra.mxu2 %v360_v30  ;;  %446 = vmatmul.f32.gmra.mxu3 %v364_v31 }
  0xc3   : > { %v402_v33 = vpop.f32.mrf.mxu0  ;;  %v414_v34 = vpop.f32.mrf.mxu1 }
  0xc4   : > { %v2421_v35 = vadd.f32 %v2418_v32, %v402_v33  ;;  %v2424_v36 = vadd.f32 %v2418_v32, %v414_v34 }
  0xc6   : > { %v2427_v37 = vmul.f32 0.70710677, %v2421_v35  ;;  %v2430_v38 = vmul.f32 0.70710677, %v2424_v36 }
  0xc8   : > { %v482_v39 = vmul.f32 %v2427_v37, %v2427_v37  ;;  %v642_v40 = vmul.f32 %v2430_v38, %v2430_v38 }
  0xca   : > { %v2436_v41 = vmin.f32 %v482_v39, 16.0  ;;  %v2438_v42 = vmin.f32 %v642_v40, 16.0  ;;  %v426_v43 = vpop.f32.mrf.mxu2  ;;  %v438_v44 = vpop.f32.mrf.mxu3 }
  0xcb   : > { %v2441_v45 = vadd.f32 %v2418_v32, %v426_v43  ;;  %v2444_v46 = vadd.f32 %v2418_v32, %v438_v44  ;;  %v405_v47 = vpop.f32.mrf.mxu0  ;;  %v417_v48 = vpop.f32.mrf.mxu1 }
  0xcc   : > { %v2447_v49 = vadd.f32 %v2418_v32, %v405_v47  ;;  %v2450_v50 = vadd.f32 %v2418_v32, %v417_v48  ;;  %v484_v51 = vmul.f32 2.1237322e-06, %v2436_v41  ;;  %v644_v54 = vmul.f32 2.1237322e-06, %v2438_v42 }
  0xcd   : > { %v2454_v52 = vmul.f32 0.70710677, %v2441_v45  ;;  %v2457_v53 = vmul.f32 0.70710677, %v2444_v46  ;;  %v2519_v48 = vmul.f32 0.5, %v2421_v35 }
  0xce   : > { %v2465_v57 = vmul.f32 0.70710677, %v2447_v49  ;;  %v2468_v58 = vmul.f32 0.70710677, %v2450_v50  ;;  %v485_v59 = vadd.f32 0.00028619796, %v484_v51 }
  0xcf   : > { %v802_v55 = vmul.f32 %v2454_v52, %v2454_v52  ;;  %v962_v56 = vmul.f32 %v2457_v53, %v2457_v53  ;;  %v645_v1 = vadd.f32 0.00028619796, %v644_v54 }
  0xd0   : > { %v522_v62 = vmul.f32 %v2465_v57, %v2465_v57  ;;  %v682_v63 = vmul.f32 %v2468_v58, %v2468_v58  ;;  %v486_v5 = vmul.f32 %v485_v59, %v2436_v41 }
  0xd1   : > { %v2470_v60 = vmin.f32 %v802_v55, 16.0  ;;  %v2472_v61 = vmin.f32 %v962_v56, 16.0  ;;  %v646_v9 = vmul.f32 %v645_v1, %v2438_v42  ;;  %v2529_v56 = vmul.f32 0.5, %v2424_v36 }
  0xd2   : > { %v429_v0 = vpop.f32.mrf.mxu2  ;;  %v441_v4 = vpop.f32.mrf.mxu3  ;;  %v2484_v7 = vmin.f32 %v522_v62, 16.0  ;;  %v2486_v8 = vmin.f32 %v682_v63, 16.0  ;;  %v487_v13 = vadd.f32 0.0036580483, %v486_v5  ;;  %v2541_v5 = vmul.f32 0.5, %v2444_v46 }
  0xd3   : > { %v804_v2 = vmul.f32 2.1237322e-06, %v2470_v60  ;;  %v2480_v3 = vadd.f32 %v2418_v32, %v429_v0  ;;  %v964_v6 = vmul.f32 2.1237322e-06, %v2472_v61  ;;  %v2490_v11 = vadd.f32 %v2418_v32, %v441_v4  ;;  %v408_v21 = vpop.f32.mrf.mxu0  ;;  %v420_v34 = vpop.f32.mrf.mxu1 }
  0xd4   : > { %v524_v15 = vmul.f32 2.1237322e-06, %v2484_v7  ;;  %v684_v16 = vmul.f32 2.1237322e-06, %v2486_v8  ;;  %v647_v18 = vadd.f32 0.0036580483, %v646_v9  ;;  %v488_v23 = vmul.f32 %v487_v13, %v2436_v41 }
  0xd5   : > { %v805_v10 = vadd.f32 0.00028619796, %v804_v2  ;;  %v2493_v12 = vmul.f32 0.70710677, %v2480_v3  ;;  %v965_v14 = vadd.f32 0.00028619796, %v964_v6  ;;  %v2511_v29 = vadd.f32 %v2418_v32, %v408_v21 }
  0xd6   : > { %v2501_v20 = vmul.f32 0.70710677, %v2490_v11  ;;  %v525_v25 = vadd.f32 0.00028619796, %v524_v15  ;;  %v685_v27 = vadd.f32 0.00028619796, %v684_v16  ;;  %v648_v30 = vmul.f32 %v647_v18, %v2438_v42 }
  0xd7   : > { %v842_v17 = vmul.f32 %v2493_v12, %v2493_v12  ;;  %v806_v19 = vmul.f32 %v805_v10, %v2470_v60  ;;  %v966_v24 = vmul.f32 %v965_v14, %v2472_v61  ;;  %v489_v40 = vadd.f32 0.05243302, %v488_v23 }
  0xd8   : > { %v1002_v26 = vmul.f32 %v2501_v20, %v2501_v20  ;;  %v526_v44 = vmul.f32 %v525_v25, %v2484_v7  ;;  %v686_v51 = vmul.f32 %v685_v27, %v2486_v8  ;;  %v2523_v54 = vmul.f32 0.70710677, %v2511_v29 }
  0xd9   : > { %v2503_v22 = vmin.f32 %v842_v17, 16.0  ;;  %v807_v31 = vadd.f32 0.0036580483, %v806_v19  ;;  %v967_v43 = vadd.f32 0.0036580483, %v966_v24  ;;  %v2526_v55 = vadd.f32 %v2418_v32, %v420_v34 }
  0xda   : > { %v2514_v33 = vmin.f32 %v1002_v26, 16.0  ;;  %v649_v59 = vadd.f32 0.05243302, %v648_v30  ;;  %v2534_v0 = vmul.f32 0.5, %v2441_v45  ;;  %v562_v1 = vmul.f32 %v2523_v54, %v2523_v54  ;;  %v432_v14 = vpop.f32.mrf.mxu2  ;;  %v444_v15 = vpop.f32.mrf.mxu3 }
  0xdb   : > { %v844_v28 = vmul.f32 2.1237322e-06, %v2503_v22  ;;  %3355 = vst [vmem:[#allocation7_spill] sm:$0xff] %v2526_v55  ;;  %v808_v62 = vmul.f32 %v807_v31, %v2470_v60  ;;  %v655_v2 = vmul.f32 3.8918573e-05, %v2438_v42  ;;  %v490_v4 = vmul.f32 %v489_v40, %v2436_v41  ;;  %v411_v34 = vpop.f32.mrf.mxu0 }
  0xdc   : > { %v1004_v47 = vmul.f32 2.1237322e-06, %v2514_v33  ;;  %v968_v36 = vmul.f32 %v967_v43, %v2472_v61  ;;  %v527_v6 = vadd.f32 0.0036580483, %v526_v44  ;;  %v2545_v9 = vmul.f32 0.5, %v2447_v49 }
  0xdd   : > { %v845_v39 = vadd.f32 0.00028619796, %v844_v28  ;;  %v687_v10 = vadd.f32 0.0036580483, %v686_v51  ;;  %v2547_v45 = vmin.f32 %v562_v1, 16.0  ;;  %v650_v16 = vmul.f32 %v649_v59, %v2438_v42 }
  0xde   : > { %v1005_v35 = vadd.f32 0.00028619796, %v1004_v47  ;;  %v2550_v13 = vmul.f32 0.70710677, %v2526_v55  ;;  %v809_v17 = vadd.f32 0.05243302, %v808_v62  ;;  %v2563_v26 = vadd.f32 %v2418_v32, %v432_v14 }
  0xdf   : > { %v846_v63 = vmul.f32 %v845_v39, %v2503_v22  ;;  %v2554_v46 = vmul.f32 0.5, %v2450_v50  ;;  %v564_v49 = vmul.f32 2.1237322e-06, %v2547_v45  ;;  %v2560_v23 = vadd.f32 0.001143296, %v655_v2 }
  0xe0   : > { %v1006_v19 = vmul.f32 %v1005_v35, %v2514_v33  ;;  %v722_v21 = vmul.f32 %v2550_v13, %v2550_v13  ;;  %v491_v24 = vadd.f32 0.18741608, %v490_v4  ;;  %v969_v25 = vadd.f32 0.05243302, %v968_v36  ;;  %3356 = vst [vmem:[#allocation8_spill] sm:$0xff] %v2563_v26 }
  0xe1   : > { %v847_v18 = vadd.f32 0.0036580483, %v846_v63  ;;  %v2566_v27 = vadd.f32 %v2418_v32, %v444_v15  ;;  %v528_v50 = vmul.f32 %v527_v6, %v2484_v7  ;;  %v688_v28 = vmul.f32 %v687_v10, %v2486_v8 }
  0xe2   : > { %v565_v30 = vadd.f32 0.00028619796, %v564_v49  ;;  %v2570_v31 = vmin.f32 %v722_v21, 16.0  ;;  %v651_v39 = vadd.f32 0.18741608, %v650_v16  ;;  %v810_v40 = vmul.f32 %v809_v17, %v2470_v60 }
  0xe3   : > { %3357 = vst [vmem:[#allocation9_spill] sm:$0xff] %v2566_v27  ;;  %v848_v43 = vmul.f32 %v847_v18, %v2503_v22  ;;  %v2575_v44 = vmul.f32 0.70710677, %v2563_v26  ;;  %v1007_v47 = vadd.f32 0.0036580483, %v1006_v19  ;;  %v492_v63 = vmul.f32 %v491_v24, %v2436_v41  ;;  %v435_v24 = vpop.f32.mrf.mxu2 }
  0xe4   : > { %v566_v51 = vmul.f32 %v565_v30, %v2547_v45  ;;  %v724_v59 = vmul.f32 2.1237322e-06, %v2570_v31  ;;  %v2580_v62 = vmul.f32 0.70710677, %v2566_v27  ;;  %v970_v35 = vmul.f32 %v969_v25, %v2472_v61 }
  0xe5   : > { %v882_v1 = vmul.f32 %v2575_v44, %v2575_v44  ;;  %v2587_v2 = vadd.f32 %v2418_v32, %v411_v34  ;;  %v529_v4 = vadd.f32 0.05243302, %v528_v50  ;;  %v689_v36 = vadd.f32 0.05243302, %v688_v28 }
  0xe6   : > { %3358 = vst [vmem:[#allocation10_spill] sm:$0xff] %v2580_v62  ;;  %v725_v6 = vadd.f32 0.00028619796, %v724_v59  ;;  %v1042_v10 = vmul.f32 %v2580_v62, %v2580_v62  ;;  %v811_v14 = vadd.f32 0.18741608, %v810_v40  ;;  %v2592_v15 = vmul.f32 0.5, %v2480_v3 }
  0xe7   : > { %3359 = vst [vmem:[#allocation11_spill] sm:$0xff] %v2587_v2  ;;  %v2594_v16 = vmin.f32 %v882_v1, 16.0  ;;  %v2597_v17 = vmul.f32 0.70710677, %v2587_v2  ;;  %v849_v18 = vadd.f32 0.05243302, %v848_v43  ;;  %v1008_v19 = vmul.f32 %v1007_v47, %v2514_v33  ;;  %v423_v47 = vpop.f32.mrf.mxu1 }
  0xe8   : > { %v567_v49 = vadd.f32 0.0036580483, %v566_v51  ;;  %v2600_v21 = vmin.f32 %v1042_v10, 16.0  ;;  %v652_v25 = vmul.f32 %v651_v39, %v2438_v42  ;;  %v2604_v50 = vmul.f32 0.5, %v2490_v11 }
  0xe9   : > { %3360 = vst [vmem:[#allocation12_spill] sm:$0xff] %v2597_v17  ;;  %v726_v3 = vmul.f32 %v725_v6, %v2570_v31  ;;  %v884_v28 = vmul.f32 2.1237322e-06, %v2594_v16  ;;  %v493_v30 = vadd.f32 1.1283791, %v492_v63  ;;  %v530_v40 = vmul.f32 %v529_v4, %v2484_v7 }
  0xea   : > { %v971_v34 = vadd.f32 0.18741608, %v970_v35  ;;  %v602_v43 = vmul.f32 %v2597_v17, %v2597_v17  ;;  %v690_v51 = vmul.f32 %v689_v36, %v2486_v8  ;;  %v1044_v39 = vmul.f32 2.1237322e-06, %v2600_v21 }
  0xeb   : > { %v885_v59 = vadd.f32 0.00028619796, %v884_v28  ;;  %v2614_v11 = vadd.f32 %v2418_v32, %v435_v24  ;;  %v812_v1 = vmul.f32 %v811_v14, %v2470_v60  ;;  %v850_v6 = vmul.f32 %v849_v18, %v2503_v22  ;;  %v447_v14 = vpop.f32.mrf.mxu3 }
  0xec   : > { %v1009_v63 = vadd.f32 0.05243302, %v1008_v19  ;;  %v568_v35 = vmul.f32 %v567_v49, %v2547_v45  ;;  %v653_v4 = vadd.f32 1.1283791, %v652_v25  ;;  %v2620_v10 = vmul.f32 0.5, %v2511_v29 }
  0xed   : > { %v727_v2 = vadd.f32 0.0036580483, %v726_v3  ;;  %v2623_v36 = vadd.f32 %v2418_v32, %v423_v47  ;;  %v972_v28 = vmul.f32 %v971_v34, %v2472_v61  ;;  %v531_v27 = vadd.f32 0.18741608, %v530_v40 }
  0xee   : > { %v886_v24 = vmul.f32 %v885_v59, %v2594_v16  ;;  %v2627_v17 = vmin.f32 %v602_v43, 16.0  ;;  %v2630_v18 = vmul.f32 %v493_v30, %v2427_v37  ;;  %v691_v19 = vadd.f32 0.18741608, %v690_v51 }
  0xef   : > { %3361 = vst [vmem:[#allocation13_spill] sm:$0xff] %v2623_v36  ;;  %v1045_v49 = vadd.f32 0.00028619796, %v1044_v39  ;;  %v2633_v29 = vmul.f32 0.70710677, %v2614_v11  ;;  %v1010_v47 = vmul.f32 %v1009_v63, %v2514_v33  ;;  %v728_v34 = vmul.f32 %v727_v2, %v2570_v31 }
  0xf0   : > { %v813_v25 = vadd.f32 1.1283791, %v812_v1  ;;  %v851_v3 = vadd.f32 0.18741608, %v850_v6  ;;  %v569_v62 = vadd.f32 0.05243302, %v568_v35  ;;  %v2643_v37 = vadd.f32 %v2418_v32, %v447_v14 }
  0xf1   : > { %v2638_v40 = vmul.f32 0.70710677, %v2623_v36  ;;  %v922_v43 = vmul.f32 %v2633_v29, %v2633_v29  ;;  %v2646_v30 = vmul.f32 %v653_v4, %v2430_v38  ;;  %v973_v51 = vadd.f32 1.1283791, %v972_v28 }
  0xf2   : > { %3363 = vst [vmem:[#allocation15_spill] sm:$0xff] %v2643_v37  ;;  %v887_v59 = vadd.f32 0.0036580483, %v886_v24  ;;  %v604_v39 = vmul.f32 2.1237322e-06, %v2627_v17  ;;  %v532_v1 = vmul.f32 %v531_v27, %v2484_v7  ;;  %v1046_v2 = vmul.f32 %v1045_v49, %v2600_v21 }
  0xf3   : > { %3362 = vst [vmem:[#allocation14_spill] sm:$0xff] %v2638_v40  ;;  %v2651_v6 = vmin.f32 %v922_v43, 16.0  ;;  %v657_v63 = vmul.f32 %v2560_v23, %v2438_v42  ;;  %v692_v35 = vmul.f32 %v691_v19, %v2486_v8  ;;  %v852_v32 = vmul.f32 %v851_v3, %v2503_v22 }
  0xf4   : > { %v1011_v14 = vadd.f32 0.18741608, %v1010_v47  ;;  %v570_v38 = vmul.f32 %v569_v62, %v2547_v45  ;;  %v729_v4 = vadd.f32 0.05243302, %v728_v34  ;;  %v762_v28 = vmul.f32 %v2638_v40, %v2638_v40 }
  0xf5   : > { %v924_v27 = vmul.f32 2.1237322e-06, %v2651_v6  ;;  %v2662_v24 = vmul.f32 0.70710677, %v2643_v37  ;;  %v2665_v49 = vmul.f32 %v813_v25, %v2454_v52  ;;  %v888_v23 = vmul.f32 %v887_v59, %v2594_v16 }
  0xf6   : > { %v605_v19 = vadd.f32 0.00028619796, %v604_v39  ;;  %v658_v43 = vadd.f32 0.014752088, %v657_v63  ;;  %v533_v3 = vadd.f32 1.1283791, %v532_v1  ;;  %v1012_v37 = vmul.f32 %v1011_v14, %v2514_v33 }
  0xf7   : > { %3364 = vst [vmem:[#allocation16_spill] sm:$0xff] %v2662_v24  ;;  %v1047_v47 = vadd.f32 0.0036580483, %v1046_v2  ;;  %v925_v36 = vadd.f32 0.00028619796, %v924_v27  ;;  %v1082_v62 = vmul.f32 %v2662_v24, %v2662_v24  ;;  %v730_v52 = vmul.f32 %v729_v4, %v2570_v31 }
  0xf8   : > { %v693_v34 = vadd.f32 1.1283791, %v692_v35  ;;  %v853_v40 = vadd.f32 1.1283791, %v852_v32  ;;  %v571_v55 = vadd.f32 0.18741608, %v570_v38  ;;  %v659_v26 = vmul.f32 %v658_v43, %v2438_v42 }
  0xf9   : > { %v2673_v25 = vmin.f32 %v762_v28, 16.0  ;;  %v926_v59 = vmul.f32 %v925_v36, %v2651_v6  ;;  %v889_v39 = vadd.f32 0.05243302, %v888_v23  ;;  %v606_v1 = vmul.f32 %v605_v19, %v2627_v17 }
  0xfa   : > { %v660_v2 = vadd.f32 0.112945676, %v659_v26  ;;  %v495_v63 = vmul.f32 3.8918573e-05, %v2436_v41  ;;  %v2679_v35 = vmul.f32 %v973_v51, %v2457_v53  ;;  %v2682_v32 = vmul.f32 %v533_v3, %v2465_v57 }
  0xfb   : > { %v1048_v14 = vmul.f32 %v1047_v47, %v2600_v21  ;;  %v2685_v38 = vmin.f32 %v1082_v62, 16.0  ;;  %v2688_v4 = vmul.f32 %v693_v34, %v2468_v58  ;;  %v572_v36 = vmul.f32 %v571_v55, %v2547_v45 }
  0xfc   : > { %v927_v28 = vadd.f32 0.0036580483, %v926_v59  ;;  %v661_v26 = vmul.f32 %v660_v2, %v2438_v42  ;;  %v2693_v27 = vmul.f32 %v853_v40, %v2493_v12  ;;  %v731_v53 = vadd.f32 0.18741608, %v730_v52 }
  0xfd   : > { %v764_v51 = vmul.f32 2.1237322e-06, %v2673_v25  ;;  %v496_v57 = vadd.f32 0.001143296, %v495_v63  ;;  %v1013_v23 = vadd.f32 1.1283791, %v1012_v37  ;;  %v890_v19 = vmul.f32 %v889_v39, %v2594_v16 }
  0xfe   : > { %v607_v43 = vadd.f32 0.0036580483, %v606_v1  ;;  %v662_v3 = vadd.f32 0.4994258, %v661_v26  ;;  %v1049_v47 = vadd.f32 0.05243302, %v1048_v14  ;;  %v928_v12 = vmul.f32 %v927_v28, %v2651_v6 }
  0xff   : > { %v1084_v58 = vmul.f32 2.1237322e-06, %v2685_v38  ;;  %v497_v55 = vmul.f32 %v496_v57, %v2436_v41  ;;  %v815_v62 = vmul.f32 3.8918573e-05, %v2470_v60  ;;  %v573_v34 = vadd.f32 1.1283791, %v572_v36 }
 0x100   : > { %v663_v40 = vmul.f32 %v662_v3, %v2438_v42  ;;  %v975_v52 = vmul.f32 3.8918573e-05, %v2472_v61  ;;  %v732_v37 = vmul.f32 %v731_v53, %v2570_v31  ;;  %v765_v59 = vadd.f32 0.00028619796, %v764_v51 }
 0x101   : > { %v498_v39 = vadd.f32 0.014752088, %v497_v55  ;;  %v816_v1 = vadd.f32 0.001143296, %v815_v62  ;;  %v891_v2 = vadd.f32 0.18741608, %v890_v19  ;;  %v608_v63 = vmul.f32 %v607_v43, %v2627_v17 }
 0x102   : > { %v2705_v14 = vadd.f32 1.0, %v663_v40  ;;  %v976_v26 = vadd.f32 0.001143296, %v975_v52  ;;  %v1050_v57 = vmul.f32 %v1049_v47, %v2600_v21  ;;  %v1085_v36 = vadd.f32 0.00028619796, %v1084_v58 }
 0x103   : > { %v499_v28 = vmul.f32 %v498_v39, %v2436_v41  ;;  %v817_v42 = vmul.f32 %v816_v1, %v2470_v60  ;;  %v2711_v3 = vmul.f32 %v1013_v23, %v2501_v20  ;;  %v929_v53 = vadd.f32 0.05243302, %v928_v12 }
 0x104   : > { %2044 = vrcp.f32 %v2705_v14  ;;  %v1015_v51 = vmul.f32 3.8918573e-05, %v2514_v33  ;;  %v733_v19 = vadd.f32 1.1283791, %v732_v37  ;;  %v766_v43 = vmul.f32 %v765_v59, %v2673_v25 }
 0x105   : > { %v2717_v55 = vmul.f32 0.5, %v2614_v11  ;;  %v500_v47 = vadd.f32 0.112945676, %v499_v28  ;;  %v2720_v58 = vmul.f32 %v573_v34, %v2523_v54  ;;  %v892_v62 = vmul.f32 %v891_v2, %v2594_v16 }
 0x106   : > { %v818_v40 = vadd.f32 0.014752088, %v817_v42  ;;  %v977_v20 = vmul.f32 %v976_v26, %v2472_v61  ;;  %v2724_v23 = vadd.f32 0.18741608, %v1050_v57  ;;  %v2726_v12 = vadd.f32 0.05243302, %v608_v63 }
 0x107   : > { %v1086_v52 = vmul.f32 %v1085_v36, %v2685_v38  ;;  %v501_v37 = vmul.f32 %v500_v47, %v2436_v41  ;;  %v930_v11 = vmul.f32 %v929_v53, %v2651_v6  ;;  %v1016_v54 = vadd.f32 0.001143296, %v1015_v51 }
 0x108   : > { %v819_v59 = vmul.f32 %v818_v40, %v2470_v60  ;;  %v978_v39 = vadd.f32 0.014752088, %v977_v20  ;;  %v2733_v34 = vmul.f32 %v733_v19, %v2550_v13  ;;  %v2735_v1 = vadd.f32 0.0036580483, %v766_v43 }
 0x109   : > { %v502_v2 = vadd.f32 0.4994258, %v501_v37  ;;  %v695_v26 = vmul.f32 3.8918573e-05, %v2486_v8  ;;  %v2738_v57 = vadd.f32 1.1283791, %v892_v62  ;;  %v1017_v42 = vmul.f32 %v1016_v54, %v2514_v33 }
 0x10a   : > { %3365 = vst [vmem:[#allocation17_spill] sm:$0xff] %v2735_v1  ;;  %v2045_v63 = vpop.eup %2044  ;;  %v820_v36 = vadd.f32 0.112945676, %v819_v59  ;;  %v979_v28 = vmul.f32 %v978_v39, %v2472_v61  ;;  %v1087_v53 = vadd.f32 0.0036580483, %v1086_v52  ;;  %v676_v39 = vand.u32 2147483648, %v2705_v14 }
 0x10b   : > { %v666_v47 = vmul.f32 %v2045_v63, %v2705_v14  ;;  %v503_v51 = vmul.f32 %v502_v2, %v2436_v41  ;;  %v696_v13 = vadd.f32 0.001143296, %v695_v26  ;;  %v931_v19 = vadd.f32 0.18741608, %v930_v11 }
 0x10c   : > { %v821_v43 = vmul.f32 %v820_v36, %v2470_v60  ;;  %v980_v40 = vadd.f32 0.112945676, %v979_v28  ;;  %v1018_v20 = vadd.f32 0.014752088, %v1017_v42  ;;  %v535_v59 = vmul.f32 3.8918573e-05, %v2484_v7 }
 0x10d   : > { %v667_v37 = vsub.f32 1.0, %v666_v47  ;;  %v2745_v24 = vadd.f32 1.0, %v503_v51  ;;  %v697_v62 = vmul.f32 %v696_v13, %v2486_v8  ;;  %vm671_vm0 = vweird.f32 %v2045_v63 }
 0x10e   : > { %v822_v52 = vadd.f32 0.4994258, %v821_v43  ;;  %v981_v54 = vmul.f32 %v980_v40, %v2472_v61  ;;  %v1019_v41 = vmul.f32 %v1018_v20, %v2514_v33  ;;  %v674_v11 = vand.u32 2147483647, %v2705_v14 }
 0x10f   : > { %v668_v2 = vmul.f32 %v2045_v63, %v667_v37  ;;  %2046 = vrcp.f32 %v2745_v24  ;;  %v2755_v26 = vmul.f32 %v1087_v53, %v2685_v38  ;;  %vm670_vm1 = vweird.f32 %v2705_v14 }
 0x110   : > { %v823_v36 = vmul.f32 %v822_v52, %v2470_v60  ;;  %v982_v28 = vadd.f32 0.4994258, %v981_v54  ;;  %v1020_v47 = vadd.f32 0.112945676, %v1019_v41  ;;  %v698_v51 = vadd.f32 0.014752088, %v697_v62  ;;  %vm672_vm2 = vmor %vm670_vm1, %vm671_vm0 }
 0x111   : > { %v669_v42 = vadd.f32 %v2045_v63, %v668_v2  ;;  %v536_v13 = vadd.f32 0.001143296, %v535_v59  ;;  %v677_v43 = vor.u32 1.1754944e-38, %v676_v39  ;;  %v514_v40 = vand.u32 2147483647, %v2745_v24 }
 0x112   : > { %v2760_v20 = vadd.f32 1.0, %v823_v36  ;;  %v983_v37 = vmul.f32 %v982_v28, %v2472_v61  ;;  %vm675_vm3 = vcmp.eq.f32.partialorder %v674_v11, 8.507059e+37  ;;  %v1021_v53 = vmul.f32 %v1020_v47, %v2514_v33 }
 0x113   : > { %v673_v1 = vsel %vm672_vm2, %v2045_v63, %v669_v42  ;;  %v699_v14 = vmul.f32 %v698_v51, %v2486_v8  ;;  %v2766_v60 = vmul.f32 %v931_v19, %v2651_v6  ;;  %v516_v62 = vand.u32 2147483648, %v2745_v24 }
 0x114   : > { %v678_v52 = vsel %vm675_vm3, %v677_v43, %v673_v1  ;;  %2048 = vrcp.f32 %v2760_v20  ;;  %v2771_v54 = vadd.f32 1.0, %v983_v37  ;;  %v1022_v61 = vadd.f32 0.4994258, %v1021_v53 }
 0x115   : > { %v2047_v59 = vpop.eup %2046  ;;  %v679_v39 = vmul.f32 %v678_v52, %v2646_v30  ;;  %v537_v63 = vmul.f32 %v536_v13, %v2484_v7  ;;  %vm510_vm4 = vweird.f32 %v2745_v24  ;;  %vm2776_vm5 = vcmp.eq.f32.partialorder %v514_v40, 8.507059e+37 }
 0x116   : > { %v506_v41 = vmul.f32 %v2047_v59, %v2745_v24  ;;  %v700_v1 = vadd.f32 0.112945676, %v699_v14  ;;  %v834_v11 = vand.u32 2147483647, %v2760_v20  ;;  %v836_v36 = vand.u32 2147483648, %v2760_v20 }
 0x117   : > { %v1870_v2 = vclamps-f32 %v679_v39, 1.0  ;;  %2050 = vrcp.f32 %v2771_v54  ;;  %v517_v28 = vor.u32 1.1754944e-38, %v516_v62  ;;  %v1023_v42 = vmul.f32 %v1022_v61, %v2514_v33 }
 0x118   : > { %v507_v30 = vsub.f32 1.0, %v506_v41  ;;  %v575_v47 = vmul.f32 3.8918573e-05, %v2547_v45  ;;  %vm830_vm6 = vweird.f32 %v2760_v20  ;;  %v701_v13 = vmul.f32 %v700_v1, %v2486_v8 }
 0x119   : > { %v1126_v51 = vadd.f32 1.0, %v1870_v2  ;;  %v538_v43 = vadd.f32 0.014752088, %v537_v63  ;;  %vm511_vm7 = vweird.f32 %v2047_v59  ;;  %v994_v53 = vand.u32 2147483647, %v2771_v54 }
 0x11a   : > { %v2049_v40 = vpop.eup %2048  ;;  %v508_v37 = vmul.f32 %v2047_v59, %v507_v30  ;;  %v2788_v14 = vadd.f32 1.0, %v1023_v42  ;;  %vm2794_vm8 = vcmp.eq.f32.partialorder %v834_v11, 8.507059e+37  ;;  %v837_v39 = vor.u32 1.1754944e-38, %v836_v36  ;;  %vm512_vm10 = vmor %vm510_vm4, %vm511_vm7 }
 0x11b   : > { %v2791_v52 = vmul.f32 %v1126_v51, %v2529_v56  ;;  %v826_v33 = vmul.f32 %v2049_v40, %v2760_v20  ;;  %v702_v61 = vadd.f32 0.4994258, %v701_v13  ;;  %vm990_vm9 = vweird.f32 %v2771_v54 }
 0x11c   : > { %v509_v41 = vadd.f32 %v2047_v59, %v508_v37  ;;  %v996_v63 = vand.u32 2147483648, %v2771_v54  ;;  %2052 = vrcp.f32 %v2788_v14  ;;  %v539_v11 = vmul.f32 %v538_v43, %v2484_v7 }
 0x11d   : > { %3368 = vst [vmem:[#allocation18_spill] sm:$0xff] %v2791_v52  ;;  %v2051_v1 = vpop.eup %2050  ;;  %1162 = vadd.xlane.f32.xlu2 %v2791_v52  ;;  %v827_v56 = vsub.f32 1.0, %v826_v33  ;;  %v703_v2 = vmul.f32 %v702_v61, %v2486_v8  ;;  %v576_v36 = vadd.f32 0.001143296, %v575_v47  ;;  %vm831_vm11 = vweird.f32 %v2049_v40 }
 0x11e   : > { %v513_v30 = vsel %vm512_vm10, %v2047_v59, %v509_v41  ;;  %v986_v42 = vmul.f32 %v2051_v1, %v2771_v54  ;;  %vm2807_vm12 = vcmp.eq.f32.partialorder %v994_v53, 8.507059e+37  ;;  %v1034_v13 = vand.u32 2147483647, %v2788_v14  ;;  %vm832_vm14 = vmor %vm830_vm6, %vm831_vm11 }
 0x11f   : > { %v518_v24 = vsel %vm2776_vm5, %v517_v28, %v513_v30  ;;  %v828_v37 = vmul.f32 %v2049_v40, %v827_v56  ;;  %v1036_v33 = vand.u32 2147483648, %v2788_v14  ;;  %v2815_v8 = vadd.f32 1.0, %v703_v2 }
 0x120   : > { %v519_v47 = vmul.f32 %v518_v24, %v2630_v18  ;;  %v987_v59 = vsub.f32 1.0, %v986_v42  ;;  %v997_v43 = vor.u32 1.1754944e-38, %v996_v63  ;;  %v540_v61 = vadd.f32 0.112945676, %v539_v11 }
 0x121   : > { %v829_v41 = vadd.f32 %v2049_v40, %v828_v37  ;;  %vm1030_vm13 = vweird.f32 %v2788_v14  ;;  %2054 = vrcp.f32 %v2815_v8  ;;  %v577_v53 = vmul.f32 %v576_v36, %v2547_v45 }
 0x122   : > { %v2053_v52 = vpop.eup %2052  ;;  %v1866_v19 = vclamps-f32 %v519_v47, 1.0  ;;  %v988_v28 = vmul.f32 %v2051_v1, %v987_v59  ;;  %vm991_vm15 = vweird.f32 %v2051_v1  ;;  %v541_v18 = vmul.f32 %v540_v61, %v2484_v7 }
 0x123   : > { %v833_v56 = vsel %vm832_vm14, %v2049_v40, %v829_v41  ;;  %v1026_v63 = vmul.f32 %v2053_v52, %v2788_v14  ;;  %vm2826_vm0 = vcmp.eq.f32.partialorder %v1034_v13, 8.507059e+37  ;;  %v1037_v11 = vor.u32 1.1754944e-38, %v1036_v33  ;;  %vm992_vm3 = vmor %vm990_vm9, %vm991_vm15 }
 0x124   : > { %v1122_v30 = vadd.f32 1.0, %v1866_v19  ;;  %v838_v36 = vsel %vm2794_vm8, %v837_v39, %v833_v56  ;;  %v989_v42 = vadd.f32 %v2051_v1, %v988_v28  ;;  %vm1031_vm1 = vweird.f32 %v2053_v52 }
 0x125   : > { %vm710_vm2 = vweird.f32 %v2815_v8  ;;  %v839_v20 = vmul.f32 %v838_v36, %v2665_v49  ;;  %v1027_v40 = vsub.f32 1.0, %v1026_v63  ;;  %v542_v24 = vadd.f32 0.4994258, %v541_v18  ;;  %vm1032_vm4 = vmor %vm1030_vm13, %vm1031_vm1 }
 0x126   : > { %v578_v13 = vadd.f32 0.014752088, %v577_v53  ;;  %v2837_v37 = vmul.f32 %v1122_v30, %v2519_v48  ;;  %v993_v33 = vsel %vm992_vm3, %v2051_v1, %v989_v42  ;;  %v855_v47 = vmul.f32 3.8918573e-05, %v2503_v22 }
 0x127   : > { %v935_v62 = vmul.f32 3.8918573e-05, %v2651_v6  ;;  %v2055_v39 = vpop.eup %2054  ;;  %v1874_v59 = vclamps-f32 %v839_v20, 1.0  ;;  %v998_v61 = vsel %vm2807_vm12, %v997_v43, %v993_v33  ;;  %v1028_v49 = vmul.f32 %v2053_v52, %v1027_v40 }
 0x128   : > { %v543_v54 = vmul.f32 %v542_v24, %v2484_v7  ;;  %1154 = vadd.xlane.f32.xlu0 %v2837_v37  ;;  %v999_v41 = vmul.f32 %v998_v61, %v2679_v35  ;;  %v706_v48 = vmul.f32 %v2055_v39, %v2815_v8  ;;  %v714_v1 = vand.u32 2147483647, %v2815_v8 }
 0x129   : > { %v579_v53 = vmul.f32 %v578_v13, %v2547_v45  ;;  %v1130_v19 = vadd.f32 1.0, %v1874_v59  ;;  %v1029_v28 = vadd.f32 %v2053_v52, %v1028_v49  ;;  %v856_v56 = vadd.f32 0.001143296, %v855_v47 }
 0x12a   : > { %v2849_v18 = vadd.f32 1.0, %v543_v54  ;;  %v1878_v51 = vclamps-f32 %v999_v41, 1.0  ;;  %v707_v7 = vsub.f32 1.0, %v706_v48  ;;  %v936_v63 = vadd.f32 0.001143296, %v935_v62 }
 0x12b   : > { %v580_v43 = vadd.f32 0.112945676, %v579_v53  ;;  %v2855_v35 = vmul.f32 %v1130_v19, %v2534_v0  ;;  %v1033_v30 = vsel %vm1032_vm4, %v2053_v52, %v1029_v28  ;;  %v716_v36 = vand.u32 2147483648, %v2815_v8 }
 0x12c   : > { %2056 = vrcp.f32 %v2849_v18  ;;  %v1134_v42 = vadd.f32 1.0, %v1878_v51  ;;  %v1038_v20 = vsel %vm2826_vm0, %v1037_v11, %v1033_v30  ;;  %v708_v40 = vmul.f32 %v2055_v39, %v707_v7 }
 0x12d   : > { %vm711_vm5 = vweird.f32 %v2055_v39  ;;  %v2862_v14 = vadd.f32 0.05243302, %v2755_v26  ;;  %1170 = vadd.xlane.f32.xlu2 %v2855_v35  ;;  %v1039_v24 = vmul.f32 %v1038_v20, %v2711_v3  ;;  %v581_v0 = vmul.f32 %v580_v43, %v2547_v45 }
 0x12e   : > { %v857_v52 = vmul.f32 %v856_v56, %v2503_v22  ;;  %v2869_v13 = vmul.f32 %v1134_v42, %v2541_v5  ;;  %v709_v33 = vadd.f32 %v2055_v39, %v708_v40  ;;  %vm715_vm6 = vcmp.eq.f32.partialorder %v714_v1, 8.507059e+37  ;;  %vm712_vm7 = vmor %vm710_vm2, %vm711_vm5 }
 0x12f   : > { %v937_v2 = vmul.f32 %v936_v63, %v2651_v6  ;;  %v1879_v11 = vclamps-f32 %v1039_v24, 1.0  ;;  %v717_v26 = vor.u32 1.1754944e-38, %v716_v36  ;;  %v582_v47 = vadd.f32 0.4994258, %v581_v0 }
 0x130   : > { %v858_v62 = vadd.f32 0.014752088, %v857_v52  ;;  %1178 = vadd.xlane.f32.xlu0 %v2869_v13  ;;  %v713_v3 = vsel %vm712_vm7, %v2055_v39, %v709_v33  ;;  %v895_v61 = vmul.f32 3.8918573e-05, %v2594_v16  ;;  %v735_v5 = vmul.f32 3.8918573e-05, %v2570_v31 }
 0x131   : > { %v938_v59 = vadd.f32 0.014752088, %v937_v2  ;;  %v1135_v54 = vadd.f32 1.0, %v1879_v11  ;;  %v718_v41 = vsel %vm715_vm6, %v717_v26, %v713_v3  ;;  %v583_v48 = vmul.f32 %v582_v47, %v2547_v45 }
 0x132   : > { %v2057_v49 = vpop.eup %2056  ;;  %v859_v1 = vmul.f32 %v858_v62, %v2503_v22  ;;  %v719_v8 = vmul.f32 %v718_v41, %v2688_v4  ;;  %v556_v19 = vand.u32 2147483648, %v2849_v18  ;;  %v896_v7 = vadd.f32 0.001143296, %v895_v61 }
 0x133   : > { %v546_v53 = vmul.f32 %v2057_v49, %v2849_v18  ;;  %v939_v39 = vmul.f32 %v938_v59, %v2651_v6  ;;  %v2884_v28 = vmul.f32 %v1135_v54, %v2604_v50  ;;  %v2886_v56 = vadd.f32 1.0, %v583_v48 }
 0x134   : > { %v860_v51 = vadd.f32 0.112945676, %v859_v1  ;;  %v1871_v43 = vclamps-f32 %v719_v8, 1.0  ;;  %v736_v30 = vadd.f32 0.001143296, %v735_v5  ;;  %vm551_vm8 = vweird.f32 %v2057_v49 }
 0x135   : > { %v547_v63 = vsub.f32 1.0, %v546_v53  ;;  %v940_v45 = vadd.f32 0.112945676, %v939_v39  ;;  %v933_v36 = vadd.f32 1.1283791, %v2766_v60  ;;  %1180 = vadd.xlane.f32.xlu1 %v2884_v28  ;;  %2058 = vrcp.f32 %v2886_v56 }
 0x136   : > { %v554_v4 = vand.u32 2147483647, %v2849_v18  ;;  %v1127_v42 = vadd.f32 1.0, %v1871_v43  ;;  %v861_v20 = vmul.f32 %v860_v51, %v2503_v22  ;;  %vm550_vm9 = vweird.f32 %v2849_v18 }
 0x137   : > { %v548_v50 = vmul.f32 %v2057_v49, %v547_v63  ;;  %v941_v40 = vmul.f32 %v940_v45, %v2651_v6  ;;  %v557_v24 = vor.u32 1.1754944e-38, %v556_v19  ;;  %v897_v0 = vmul.f32 %v896_v7, %v2594_v16  ;;  %vm552_vm10 = vmor %vm550_vm9, %vm551_vm8 }
 0x138   : > { %v737_v60 = vmul.f32 %v736_v30, %v2570_v31  ;;  %v2898_v52 = vmul.f32 %v1127_v42, %v2554_v46  ;;  %v862_v2 = vadd.f32 0.4994258, %v861_v20  ;;  %v2902_v26 = vmul.f32 %v2726_v12, %v2627_v17 }
 0x139   : > { %v549_v33 = vadd.f32 %v2057_v49, %v548_v50  ;;  %v942_v11 = vadd.f32 0.4994258, %v941_v40  ;;  %v898_v47 = vadd.f32 0.014752088, %v897_v0  ;;  %v1055_v18 = vmul.f32 3.8918573e-05, %v2600_v21 }
 0x13a   : > { %v738_v62 = vadd.f32 0.014752088, %v737_v60  ;;  %1164 = vadd.xlane.f32.xlu2 %v2898_v52  ;;  %vm555_vm11 = vcmp.eq.f32.partialorder %v554_v4, 8.507059e+37  ;;  %v863_v46 = vmul.f32 %v862_v2, %v2503_v22  ;;  %v594_v54 = vand.u32 2147483647, %v2886_v56 }
 0x13b   : > { %v553_v3 = vsel %vm552_vm10, %v2057_v49, %v549_v33  ;;  %v943_v59 = vmul.f32 %v942_v11, %v2651_v6  ;;  %v2059_v61 = vpop.eup %2058  ;;  %v899_v12 = vmul.f32 %v898_v47, %v2594_v16  ;;  %v1056_v49 = vadd.f32 0.001143296, %v1055_v18 }
 0x13c   : > { %v558_v5 = vsel %vm555_vm11, %v557_v24, %v553_v3  ;;  %v739_v41 = vmul.f32 %v738_v62, %v2570_v31  ;;  %v586_v1 = vmul.f32 %v2059_v61, %v2886_v56  ;;  %v2914_v8 = vadd.f32 1.0, %v863_v46 }
 0x13d   : > { %v559_v48 = vmul.f32 %v558_v5, %v2682_v32  ;;  %v2918_v22 = vmul.f32 %v2738_v57, %v2575_v44  ;;  %v2920_v6 = vadd.f32 1.0, %v943_v59  ;;  %v900_v53 = vadd.f32 0.112945676, %v899_v12 }
 0x13e   : > { %v740_v19 = vadd.f32 0.112945676, %v739_v41  ;;  %v587_v51 = vsub.f32 1.0, %v586_v1  ;;  %v596_v7 = vand.u32 2147483648, %v2886_v56  ;;  %2060 = vrcp.f32 %v2914_v8 }
 0x13f   : > { %v1867_v39 = vclamps-f32 %v559_v48, 1.0  ;;  %v2925_v32 = vmul.f32 %v933_v36, %v2633_v29  ;;  %v2929_v43 = vmul.f32 %v2862_v14, %v2685_v38  ;;  %vm590_vm12 = vweird.f32 %v2886_v56 }
 0x140   : > { %2062 = vrcp.f32 %v2920_v6  ;;  %v588_v57 = vmul.f32 %v2059_v61, %v587_v51  ;;  %vm591_vm13 = vweird.f32 %v2059_v61  ;;  %v1057_v63 = vmul.f32 %v1056_v49, %v2600_v21 }
 0x141   : > { %v1123_v44 = vadd.f32 1.0, %v1867_v39  ;;  %v874_v45 = vand.u32 2147483647, %v2914_v8  ;;  %v901_v30 = vmul.f32 %v900_v53, %v2594_v16  ;;  %v741_v29 = vmul.f32 %v740_v19, %v2570_v31  ;;  %vm592_vm15 = vmor %vm590_vm12, %vm591_vm13 }
 0x142   : > { %v615_v36 = vmul.f32 3.8918573e-05, %v2627_v17  ;;  %v589_v4 = vadd.f32 %v2059_v61, %v588_v57  ;;  %vm595_vm14 = vcmp.eq.f32.partialorder %v594_v54, 8.507059e+37  ;;  %v597_v56 = vor.u32 1.1754944e-38, %v596_v7 }
 0x143   : > { %v2939_v14 = vmul.f32 %v1123_v44, %v2545_v9  ;;  %vm870_vm0 = vweird.f32 %v2914_v8  ;;  %v876_v42 = vand.u32 2147483648, %v2914_v8  ;;  %v902_v50 = vadd.f32 0.4994258, %v901_v30 }
 0x144   : > { %v742_v20 = vadd.f32 0.4994258, %v741_v29  ;;  %v2061_v40 = vpop.eup %2060  ;;  %v593_v24 = vsel %vm592_vm15, %v2059_v61, %v589_v4  ;;  %vm950_vm1 = vweird.f32 %v2920_v6  ;;  %v954_v0 = vand.u32 2147483647, %v2920_v6 }
 0x145   : > { %1156 = vadd.xlane.f32.xlu0 %v2939_v14  ;;  %v956_v9 = vand.u32 2147483648, %v2920_v6  ;;  %v1058_v60 = vadd.f32 0.014752088, %v1057_v63  ;;  %v598_v2 = vsel %vm595_vm14, %v597_v56, %v593_v24  ;;  %v866_v11 = vmul.f32 %v2061_v40, %v2914_v8 }
 0x146   : > { %v2063_v33 = vpop.eup %2062  ;;  %vm2948_vm2 = vcmp.eq.f32.partialorder %v874_v45, 8.507059e+37  ;;  %v903_v62 = vmul.f32 %v902_v50, %v2594_v16  ;;  %v616_v18 = vadd.f32 0.001143296, %v615_v36  ;;  %v599_v3 = vmul.f32 %v598_v2, %v2720_v58 }
 0x147   : > { %v946_v46 = vmul.f32 %v2063_v33, %v2920_v6  ;;  %v743_v59 = vmul.f32 %v742_v20, %v2570_v31  ;;  %v1095_v61 = vmul.f32 3.8918573e-05, %v2685_v38  ;;  %v867_v5 = vsub.f32 1.0, %v866_v11 }
 0x148   : > { %vm871_vm3 = vweird.f32 %v2061_v40  ;;  %v877_v54 = vor.u32 1.1754944e-38, %v876_v42  ;;  %v2957_v12 = vadd.f32 1.0, %v903_v62  ;;  %v1868_v41 = vclamps-f32 %v599_v3, 1.0 }
 0x149   : > { %v947_v48 = vsub.f32 1.0, %v946_v46  ;;  %vm951_vm4 = vweird.f32 %v2063_v33  ;;  %v2959_v1 = vadd.f32 1.0, %v743_v59  ;;  %v868_v16 = vmul.f32 %v2061_v40, %v867_v5  ;;  %vm872_vm6 = vmor %vm870_vm0, %vm871_vm3 }
 0x14a   : > { %2064 = vrcp.f32 %v2957_v12  ;;  %v1059_v58 = vmul.f32 %v1058_v60, %v2600_v21  ;;  %v617_v49 = vmul.f32 %v616_v18, %v2627_v17  ;;  %v1124_v31 = vadd.f32 1.0, %v1868_v41  ;;  %vm952_vm7 = vmor %vm950_vm1, %vm951_vm4 }
 0x14b   : > { %v948_v53 = vmul.f32 %v2063_v33, %v947_v48  ;;  %2066 = vrcp.f32 %v2959_v1  ;;  %v1096_v19 = vadd.f32 0.001143296, %v1095_v61  ;;  %v869_v39 = vadd.f32 %v2061_v40, %v868_v16 }
 0x14c   : > { %vm2965_vm5 = vcmp.eq.f32.partialorder %v954_v0, 8.507059e+37  ;;  %v957_v7 = vor.u32 1.1754944e-38, %v956_v9  ;;  %v775_v44 = vmul.f32 3.8918573e-05, %v2673_v25  ;;  %v2971_v57 = vmul.f32 %v1124_v31, %v2620_v10 }
 0x14d   : > { %v949_v63 = vadd.f32 %v2063_v33, %v948_v53  ;;  %v914_v45 = vand.u32 2147483647, %v2957_v12  ;;  %v916_v30 = vand.u32 2147483648, %v2957_v12  ;;  %v873_v29 = vsel %vm872_vm6, %v2061_v40, %v869_v39 }
 0x14e   : > { %vm750_vm8 = vweird.f32 %v2959_v1  ;;  %v754_v36 = vand.u32 2147483647, %v2959_v1  ;;  %v1060_v10 = vadd.f32 0.112945676, %v1059_v58  ;;  %v618_v4 = vadd.f32 0.014752088, %v617_v49  ;;  %1158 = vadd.xlane.f32.xlu1 %v2971_v57 }
 0x14f   : > { %v878_v8 = vsel %vm2948_vm2, %v877_v54, %v873_v29  ;;  %v953_v56 = vsel %vm952_vm7, %v2063_v33, %v949_v63  ;;  %vm910_vm9 = vweird.f32 %v2957_v12  ;;  %v756_v42 = vand.u32 2147483648, %v2959_v1 }
 0x150   : > { %v1097_v50 = vmul.f32 %v1096_v19, %v2685_v38  ;;  %v2065_v6 = vpop.eup %2064  ;;  %v879_v20 = vmul.f32 %v878_v8, %v2693_v27  ;;  %v958_v40 = vsel %vm2965_vm5, %v957_v7, %v953_v56  ;;  %v1061_v24 = vmul.f32 %v1060_v10, %v2600_v21 }
 0x151   : > { %v619_v0 = vmul.f32 %v618_v4, %v2627_v17  ;;  %v2067_v9 = vpop.eup %2066  ;;  %v959_v60 = vmul.f32 %v958_v40, %v2925_v32  ;;  %v906_v33 = vmul.f32 %v2065_v6, %v2957_v12  ;;  %vm911_vm10 = vweird.f32 %v2065_v6  ;;  %v3379_v40 = vld [vmem:[#allocation17_spill] sm:$0xff] }
 0x152   : > { %v1098_v2 = vadd.f32 0.014752088, %v1097_v50  ;;  %v1875_v11 = vclamps-f32 %v879_v20, 1.0  ;;  %v746_v47 = vmul.f32 %v2067_v9, %v2959_v1  ;;  %vm751_vm11 = vweird.f32 %v2067_v9  ;;  %vm912_vm12 = vmor %vm910_vm9, %vm911_vm10 }
 0x153   : > { %v1062_v62 = vadd.f32 0.4994258, %v1061_v24  ;;  %v1877_v27 = vclamps-f32 %v959_v60, 1.0  ;;  %v907_v18 = vsub.f32 1.0, %v906_v33  ;;  %v620_v3 = vadd.f32 0.112945676, %v619_v0  ;;  %vm752_vm14 = vmor %vm750_vm8, %vm751_vm11 }
 0x154   : > { %v1099_v46 = vmul.f32 %v1098_v2, %v2685_v38  ;;  %v1131_v59 = vadd.f32 1.0, %v1875_v11  ;;  %v747_v61 = vsub.f32 1.0, %v746_v47  ;;  %v776_v54 = vadd.f32 0.001143296, %v775_v44  ;;  %v3381_v11 = vld [vmem:[#allocation7_spill] sm:$0xff] }
 0x155   : > { %v1063_v5 = vmul.f32 %v1062_v62, %v2600_v21  ;;  %v1133_v32 = vadd.f32 1.0, %v1877_v27  ;;  %v908_v41 = vmul.f32 %v2065_v6, %v907_v18  ;;  %v621_v48 = vmul.f32 %v620_v3, %v2627_v17 }
 0x156   : > { %v1100_v16 = vadd.f32 0.112945676, %v1099_v46  ;;  %v3001_v58 = vmul.f32 %v1131_v59, %v2592_v15  ;;  %v748_v49 = vmul.f32 %v2067_v9, %v747_v61  ;;  %v777_v53 = vmul.f32 %v776_v54, %v2673_v25 }
 0x157   : > { %v3003_v31 = vadd.f32 1.0, %v1063_v5  ;;  %v3007_v19 = vmul.f32 %v1133_v32, %v2717_v55  ;;  %v909_v39 = vadd.f32 %v2065_v6, %v908_v41  ;;  %v622_v51 = vadd.f32 0.4994258, %v621_v48  ;;  %v3382_v41 = vld [vmem:[#allocation10_spill] sm:$0xff] }
 0x158   : > { %v1101_v7 = vmul.f32 %v1100_v16, %v2685_v38  ;;  %1172 = vadd.xlane.f32.xlu0 %v3001_v58  ;;  %vm915_vm13 = vcmp.eq.f32.partialorder %v914_v45, 8.507059e+37  ;;  %v917_v15 = vor.u32 1.1754944e-38, %v916_v30  ;;  %v749_v44 = vadd.f32 %v2067_v9, %v748_v49 }
 0x159   : > { %2068 = vrcp.f32 %v3003_v31  ;;  %1176 = vadd.xlane.f32.xlu2 %v3007_v19  ;;  %v913_v63 = vsel %vm912_vm12, %v2065_v6, %v909_v39  ;;  %v757_v55 = vor.u32 1.1754944e-38, %v756_v42  ;;  %v623_v29 = vmul.f32 %v622_v51, %v2627_v17 }
 0x15a   : > { %v1102_v10 = vadd.f32 0.4994258, %v1101_v7  ;;  %v918_v4 = vsel %vm915_vm13, %v917_v15, %v913_v63  ;;  %v753_v8 = vsel %vm752_vm14, %v2067_v9, %v749_v44  ;;  %vm755_vm15 = vcmp.eq.f32.partialorder %v754_v36, 8.507059e+37 }
 0x15b   : > { %v778_v12 = vadd.f32 0.014752088, %v777_v53  ;;  %v919_v45 = vmul.f32 %v918_v4, %v2918_v22  ;;  %v758_v30 = vsel %vm755_vm15, %v757_v55, %v753_v8  ;;  %v3021_v56 = vadd.f32 1.0, %v623_v29 }
 0x15c   : > { %v1052_v50 = vmul.f32 %v2724_v23, %v2600_v21  ;;  %v759_v6 = vmul.f32 %v758_v30, %v2733_v34  ;;  %v1103_v1 = vmul.f32 %v1102_v10, %v2685_v38  ;;  %v611_v20 = vadd.f32 0.18741608, %v2902_v26  ;;  %v3380_v23 = vld [vmem:[#allocation8_spill] sm:$0xff] }
 0x15d   : > { %v779_v42 = vmul.f32 %v778_v12, %v2673_v25  ;;  %v768_v36 = vmul.f32 %v3379_v40, %v2673_v25  ;;  %v1876_v24 = vclamps-f32 %v919_v45, 1.0  ;;  %2070 = vrcp.f32 %v3021_v56 }
 0x15e   : > { %v1091_v0 = vadd.f32 0.18741608, %v2929_v43  ;;  %v1872_v9 = vclamps-f32 %v759_v6, 1.0  ;;  %v3033_v60 = vadd.f32 1.0, %v1103_v1  ;;  %v460_v34 = vmul.f32 0.5, %v3380_v23 }
 0x15f   : > { %v2069_v22 = vpop.eup %2068  ;;  %v780_v21 = vadd.f32 0.112945676, %v779_v42  ;;  %v1132_v33 = vadd.f32 1.0, %v1876_v24  ;;  %v456_v26 = vmul.f32 0.5, %v3381_v11  ;;  %v1053_v47 = vadd.f32 1.1283791, %v1052_v50 }
 0x160   : > { %v1066_v2 = vmul.f32 %v2069_v22, %v3003_v31  ;;  %v1128_v62 = vadd.f32 1.0, %v1872_v9  ;;  %2072 = vrcp.f32 %v3033_v60  ;;  %v612_v27 = vmul.f32 %v611_v20, %v2627_v17  ;;  %v3385_v11 = vld [vmem:[#allocation16_spill] sm:$0xff] }
 0x161   : > { %v769_v18 = vadd.f32 0.05243302, %v768_v36  ;;  %v3040_v3 = vmul.f32 %v1132_v33, %v460_v34  ;;  %v1092_v46 = vmul.f32 %v1091_v0, %v2685_v38  ;;  %v1076_v61 = vand.u32 2147483648, %v3003_v31  ;;  %v3383_v36 = vld [vmem:[#allocation12_spill] sm:$0xff] }
 0x162   : > { %v1067_v43 = vsub.f32 1.0, %v1066_v2  ;;  %v3043_v59 = vmul.f32 %v1128_v62, %v456_v26  ;;  %v781_v5 = vmul.f32 %v780_v21, %v2673_v25  ;;  %vm1070_vm0 = vweird.f32 %v3003_v31 }
 0x163   : > { %v2071_v54 = vpop.eup %2070  ;;  %1174 = vadd.xlane.f32.xlu1 %v3040_v3  ;;  %vm1071_vm1 = vweird.f32 %v2069_v22  ;;  %v1074_v17 = vand.u32 2147483647, %v3003_v31  ;;  %v1054_v48 = vmul.f32 %v1053_v47, %v3382_v41  ;;  %v613_v49 = vadd.f32 1.1283791, %v612_v27 }
 0x164   : > { %v1068_v32 = vmul.f32 %v2069_v22, %v1067_v43  ;;  %1166 = vadd.xlane.f32.xlu0 %v3043_v59  ;;  %v626_v38 = vmul.f32 %v2071_v54, %v3021_v56  ;;  %v782_v16 = vadd.f32 0.4994258, %v781_v5  ;;  %v770_v53 = vmul.f32 %v769_v18, %v2673_v25  ;;  %vm1072_vm2 = vmor %vm1070_vm0, %vm1071_vm1 }
 0x165   : > { %v636_v51 = vand.u32 2147483648, %v3021_v56  ;;  %v1093_v15 = vadd.f32 1.1283791, %v1092_v46  ;;  %v1077_v44 = vor.u32 1.1754944e-38, %v1076_v61  ;;  %vm1075_vm3 = vcmp.eq.f32.partialorder %v1074_v17, 8.507059e+37  ;;  %v3387_v17 = vld [vmem:[#allocation15_spill] sm:$0xff] }
 0x166   : > { %v1069_v39 = vadd.f32 %v2069_v22, %v1068_v32  ;;  %v2073_v7 = vpop.eup %2072  ;;  %v627_v63 = vsub.f32 1.0, %v626_v38  ;;  %v783_v31 = vmul.f32 %v782_v16, %v2673_v25  ;;  %v634_v29 = vand.u32 2147483647, %v3021_v56 }
 0x167   : > { %v1106_v10 = vmul.f32 %v2073_v7, %v3033_v60  ;;  %vm631_vm4 = vweird.f32 %v2071_v54  ;;  %vm630_vm5 = vweird.f32 %v3021_v56  ;;  %v637_v30 = vor.u32 1.1754944e-38, %v636_v51  ;;  %v3384_v56 = vld [vmem:[#allocation9_spill] sm:$0xff] }
 0x168   : > { %v1073_v55 = vsel %vm1072_vm2, %v2069_v22, %v1069_v39  ;;  %v628_v8 = vmul.f32 %v2071_v54, %v627_v63  ;;  %v784_v12 = vadd.f32 1.0, %v783_v31  ;;  %vm1110_vm6 = vweird.f32 %v3033_v60  ;;  %vm632_vm7 = vmor %vm630_vm5, %vm631_vm4  ;;  %v3388_v31 = vld [vmem:[#allocation14_spill] sm:$0xff] }
 0x169   : > { %v1078_v4 = vsel %vm1075_vm3, %v1077_v44, %v1073_v55  ;;  %v1107_v50 = vsub.f32 1.0, %v1106_v10  ;;  %v1116_v1 = vand.u32 2147483648, %v3033_v60  ;;  %vm1111_vm8 = vweird.f32 %v2073_v7 }
 0x16a   : > { %v1079_v45 = vmul.f32 %v1078_v4, %v1054_v48  ;;  %v629_v6 = vadd.f32 %v2071_v54, %v628_v8  ;;  %2074 = vrcp.f32 %v784_v12  ;;  %v1114_v40 = vand.u32 2147483647, %v3033_v60  ;;  %vm1112_vm10 = vmor %vm1110_vm6, %vm1111_vm8 }
 0x16b   : > { %v1108_v20 = vmul.f32 %v2073_v7, %v1107_v50  ;;  %v614_v24 = vmul.f32 %v613_v49, %v3383_v36  ;;  %v771_v22 = vadd.f32 0.18741608, %v770_v53  ;;  %vm635_vm9 = vcmp.eq.f32.partialorder %v634_v29, 8.507059e+37 }
 0x16c   : > { %v1880_v42 = vclamps-f32 %v1079_v45, 1.0  ;;  %v633_v0 = vsel %vm632_vm7, %v2071_v54, %v629_v6  ;;  %v464_v9 = vmul.f32 0.5, %v3384_v56  ;;  %v1117_v2 = vor.u32 1.1754944e-38, %v1116_v1  ;;  %v3386_v54 = vld [vmem:[#allocation11_spill] sm:$0xff] }
 0x16d   : > { %v638_v23 = vsel %vm635_vm9, %v637_v30, %v633_v0  ;;  %v1109_v34 = vadd.f32 %v2073_v7, %v1108_v20  ;;  %v1094_v26 = vmul.f32 %v1093_v15, %v3385_v11  ;;  %vm1115_vm11 = vcmp.eq.f32.partialorder %v1114_v40, 8.507059e+37  ;;  %v3390_v0 = vld [vmem:[#allocation18_spill] sm:$0xff] }
 0x16e   : > { %v1136_v21 = vadd.f32 1.0, %v1880_v42  ;;  %v639_v33 = vmul.f32 %v638_v23, %v614_v24  ;;  %v772_v18 = vmul.f32 %v771_v22, %v2673_v25  ;;  %v453_v32 = vmul.f32 0.5, %v3386_v54 }
 0x16f   : > { %v1113_v62 = vsel %vm1112_vm10, %v2073_v7, %v1109_v34  ;;  %v465_v41 = vmul.f32 0.5, %v3387_v17  ;;  %vm790_vm12 = vweird.f32 %v784_v12  ;;  %v796_v53 = vand.u32 2147483648, %v784_v12 }
 0x170   : > { %v3067_v47 = vmul.f32 %v1136_v21, %v464_v9  ;;  %v2075_v27 = vpop.eup %2074  ;;  %v1869_v43 = vclamps-f32 %v639_v33, 1.0  ;;  %v1118_v46 = vsel %vm1115_vm11, %v1117_v2, %v1113_v62  ;;  %v773_v16 = vadd.f32 1.1283791, %v772_v18 }
 0x171   : > { %v1119_v61 = vmul.f32 %v1118_v46, %v1094_v26  ;;  %v786_v5 = vmul.f32 %v2075_v27, %v784_v12  ;;  %vm791_vm13 = vweird.f32 %v2075_v27  ;;  %v794_v51 = vand.u32 2147483647, %v784_v12  ;;  %v3389_v12 = vld [vmem:[#allocation13_spill] sm:$0xff] }
 0x172   : > { %1182 = vadd.xlane.f32.xlu2 %v3067_v47  ;;  %v1125_v60 = vadd.f32 1.0, %v1869_v43  ;;  %v2196_v7 = vmov 128.0   ;;  %vm792_vm14 = vmor %vm790_vm12, %vm791_vm13  ;;  %v797_v63 = vor.u32 1.1754944e-38, %v796_v53  ;;  %v774_v55 = vmul.f32 %v773_v16, %v3388_v31 }
 0x173   : > { %v1881_v48 = vclamps-f32 %v1119_v61, 1.0  ;;  %v787_v38 = vsub.f32 1.0, %v786_v5  ;;  %2076 = vrcp.f32 %v2196_v7  ;;  %vm795_vm15 = vcmp.eq.f32.partialorder %v794_v51, 8.507059e+37 }
 0x174   : > { %v3073_v49 = vmul.f32 %v1125_v60, %v453_v32  ;;  %v457_v30 = vmul.f32 0.5, %v3389_v12 }
 0x175   : > { %v1137_v39 = vadd.f32 1.0, %v1881_v48  ;;  %v788_v25 = vmul.f32 %v2075_v27, %v787_v38 }
 0x176   : > { %1160 = vadd.xlane.f32.xlu1 %v3073_v49 }
 0x177   : > { %v3076_v15 = vmul.f32 %v1137_v39, %v465_v41  ;;  %v789_v44 = vadd.f32 %v2075_v27, %v788_v25 }
 0x179   : > { %1184 = vadd.xlane.f32.xlu0 %v3076_v15  ;;  %v793_v29 = vsel %vm792_vm14, %v2075_v27, %v789_v44  ;;  %v2077_v8 = vpop.eup %2076 }
 0x17a   : > { %v798_v10 = vsel %vm795_vm15, %v797_v63, %v793_v29  ;;  %v1187_v6 = vmul.f32 128.0, %v2077_v8  ;;  %vm1191_vm0 = vweird.f32 %v2077_v8 }
 0x17b   : > { %v799_v4 = vmul.f32 %v798_v10, %v774_v55 }
 0x17c   : > { %v1188_v42 = vsub.f32 1.0, %v1187_v6 }
 0x17d   : > { %v1873_v45 = vclamps-f32 %v799_v4, 1.0 }
 0x17e   : > { %v1189_v20 = vmul.f32 %v2077_v8, %v1188_v42 }
 0x17f   : > { %v1129_v50 = vadd.f32 1.0, %v1873_v45 }
 0x180   : > { %v1190_v40 = vadd.f32 %v2077_v8, %v1189_v20 }
 0x181   : > { %v3081_v1 = vmul.f32 %v1129_v50, %v457_v30 }
 0x182   : > { %v3084_v36 = vsel %vm1191_vm0, %v2077_v8, %v1190_v40 }
 0x183   : > { %1168 = vadd.xlane.f32.xlu1 %v3081_v1 }
 0x190   : > { %v1163_v24 = vpop.xlane.xlu2 %1162 }
 0x191   : > { %v1197_v22 = vmul.f32 %v3084_v36, %v1163_v24 }
 0x193   : > { %v3088_v56 = vsub.f32 %v3390_v0, %v1197_v22 }
 0x195   : > { %v1229_v9 = vmul.f32 %v3088_v56, %v3088_v56 }
 0x197   : > { %1249 = vadd.xlane.f32.xlu2 %v1229_v9 }
 0x19b   : > { %v1155_v21 = vpop.xlane.xlu0 %1154 }
 0x19c   : > { %v1193_v23 = vmul.f32 %v3084_v36, %v1155_v21 }
 0x19e   : > { %v3094_v34 = vsub.f32 %v2837_v37, %v1193_v23 }
 0x1a0   : > { %v1225_v33 = vmul.f32 %v3094_v34, %v3094_v34  ;;  %v1171_v2 = vpop.xlane.xlu2 %1170 }
 0x1a1   : > { %v1201_v11 = vmul.f32 %v3084_v36, %v1171_v2 }
 0x1a2   : > { %1241 = vadd.xlane.f32.xlu1 %v1225_v33 }
 0x1a3   : > { %v3100_v26 = vsub.f32 %v2855_v35, %v1201_v11  ;;  %v1179_v62 = vpop.xlane.xlu0 %1178 }
 0x1a4   : > { %v1205_v27 = vmul.f32 %v3084_v36, %v1179_v62 }
 0x1a5   : > { %v1233_v18 = vmul.f32 %v3100_v26, %v3100_v26 }
 0x1a6   : > { %v3106_v43 = vsub.f32 %v2869_v13, %v1205_v27 }
 0x1a7   : > { %1257 = vadd.xlane.f32.xlu0 %v1233_v18 }
 0x1a8   : > { %v1237_v37 = vmul.f32 %v3106_v43, %v3106_v43  ;;  %v1181_v54 = vpop.xlane.xlu1 %1180 }
 0x1a9   : > { %v1206_v22 = vmul.f32 %v3084_v36, %v1181_v54 }
 0x1aa   : > { %1265 = vadd.xlane.f32.xlu1 %v1237_v37 }
 0x1ab   : > { %v3178_v9 = vsub.f32 %v2884_v28, %v1206_v22 }
 0x1ad   : > { %v1165_v46 = vpop.xlane.xlu2 %1164 }
 0x1ae   : > { %v1198_v61 = vmul.f32 %v3084_v36, %v1165_v46 }
 0x1b0   : > { %v3112_v35 = vsub.f32 %v2898_v52, %v1198_v61 }
 0x1b2   : > { %v1230_v5 = vmul.f32 %v3112_v35, %v3112_v35 }
 0x1b4   : > { %1251 = vadd.xlane.f32.xlu0 %v1230_v5 }
 0x1b8   : > { %v1157_v32 = vpop.xlane.xlu0 %1156 }
 0x1b9   : > { %v1194_v13 = vmul.f32 %v3084_v36, %v1157_v32 }
 0x1bb   : > { %v3118_v60 = vsub.f32 %v2939_v14, %v1194_v13 }
 0x1bd   : > { %v1226_v17 = vmul.f32 %v3118_v60, %v3118_v60 }
 0x1bf   : > { %1243 = vadd.xlane.f32.xlu2 %v1226_v17  ;;  %v3189_v17 = vld [vmem:[%s3336_s3] ss:$0 sm:$0xff] }
 0x1c1   : > { %v1159_v41 = vpop.xlane.xlu1 %1158 }
 0x1c2   : > { %v1195_v48 = vmul.f32 %v3084_v36, %v1159_v41 }
 0x1c4   : > { %v3124_v52 = vsub.f32 %v2971_v57, %v1195_v48 }
 0x1c6   : > { %v1227_v38 = vmul.f32 %v3124_v52, %v3124_v52 }
 0x1c8   : > { %1245 = vadd.xlane.f32.xlu0 %v1227_v38 }
 0x1cb   : > { %v1173_v16 = vpop.xlane.xlu0 %1172 }
 0x1cc   : > { %v1202_v53 = vmul.f32 %v3084_v36, %v1173_v16  ;;  %v1177_v39 = vpop.xlane.xlu2 %1176  ;;  %v3194_v16 = vld [vmem:[%s3337_s4] ss:$0 sm:$0xff] }
 0x1cd   : > { %v1204_v14 = vmul.f32 %v3084_v36, %v1177_v39 }
 0x1ce   : > { %v3131_v25 = vsub.f32 %v3001_v58, %v1202_v53 }
 0x1cf   : > { %v3134_v51 = vsub.f32 %v3007_v19, %v1204_v14 }
 0x1d0   : > { %v1234_v57 = vmul.f32 %v3131_v25, %v3131_v25 }
 0x1d1   : > { %v1236_v7 = vmul.f32 %v3134_v51, %v3134_v51 }
 0x1d2   : > { %1259 = vadd.xlane.f32.xlu1 %v1234_v57 }
 0x1d3   : > { %1263 = vadd.xlane.f32.xlu0 %v1236_v7 }
 0x1d6   : > { %v1175_v44 = vpop.xlane.xlu1 %1174 }
 0x1d7   : > { %v1203_v63 = vmul.f32 %v3084_v36, %v1175_v44  ;;  %v1167_v31 = vpop.xlane.xlu0 %1166 }
 0x1d8   : > { %v1199_v55 = vmul.f32 %v3084_v36, %v1167_v31 }
 0x1d9   : > { %v3143_v58 = vsub.f32 %v3040_v3, %v1203_v63 }
 0x1da   : > { %v3146_v19 = vsub.f32 %v3043_v59, %v1199_v55 }
 0x1db   : > { %v1235_v29 = vmul.f32 %v3143_v58, %v3143_v58 }
 0x1dc   : > { %v1231_v10 = vmul.f32 %v3146_v19, %v3146_v19 }
 0x1dd   : > { %1261 = vadd.xlane.f32.xlu2 %v1235_v29 }
 0x1de   : > { %1253 = vadd.xlane.f32.xlu1 %v1231_v10 }
 0x1e5   : > { %v1183_v4 = vpop.xlane.xlu2 %1182 }
 0x1e6   : > { %v1207_v8 = vmul.f32 %v3084_v36, %v1183_v4 }
 0x1e8   : > { %v3154_v45 = vsub.f32 %v3067_v47, %v1207_v8 }
 0x1e9   : > { %v1161_v12 = vpop.xlane.xlu1 %1160 }
 0x1ea   : > { %v1239_v3 = vmul.f32 %v3154_v45, %v3154_v45  ;;  %v1196_v59 = vmul.f32 %v3084_v36, %v1161_v12 }
 0x1ec   : > { %1269 = vadd.xlane.f32.xlu0 %v1239_v3  ;;  %v3160_v30 = vsub.f32 %v3073_v49, %v1196_v59  ;;  %v1185_v50 = vpop.xlane.xlu0 %1184 }
 0x1ed   : > { %v1208_v6 = vmul.f32 %v3084_v36, %v1185_v50 }
 0x1ee   : > { %v1228_v42 = vmul.f32 %v3160_v30, %v3160_v30 }
 0x1ef   : > { %v3166_v47 = vsub.f32 %v3076_v15, %v1208_v6  ;;  %v1238_v15 = vmul.f32 %v3178_v9, %v3178_v9 }
 0x1f0   : > { %1247 = vadd.xlane.f32.xlu1 %v1228_v42 }
 0x1f1   : > { %v1240_v40 = vmul.f32 %v3166_v47, %v3166_v47 }
 0x1f6   : > { %v1169_v20 = vpop.xlane.xlu1 %1168 }
 0x1f7   : > { %v1200_v24 = vmul.f32 %v3084_v36, %v1169_v20 }
 0x1f8   : > { %1271 = vadd.xlane.f32.xlu1 %v1240_v40 }
 0x1f9   : > { %v3172_v49 = vsub.f32 %v3081_v1, %v1200_v24 }
 0x1fb   : > { %v1232_v0 = vmul.f32 %v3172_v49, %v3172_v49 }
 0x1fd   : > { %1255 = vadd.xlane.f32.xlu2 %v1232_v0 }
 0x205   : > { %1267 = vadd.xlane.f32.xlu2 %v1238_v15 }
 0x20a   : > { %v1250_v21 = vpop.xlane.xlu2 %1249 }
 0x20b   : > { %v1277_v23 = vmul.f32 %v1250_v21, %v3084_v36 }
 0x20d   : > { %v1293_v33 = vadd.f32 1e-05, %v1277_v23 }
 0x20f   : > { %2078 = vrsqrt.f32 %v1293_v33  ;;  %vm1351_vm2 = vweird.f32 %v1293_v33 }
 0x215   : > { %v2079_v1 = vpop.eup %2078  ;;  %v1242_v2 = vpop.xlane.xlu1 %1241 }
 0x216   : > { %v1346_v11 = vmul.f32 %v2079_v1, %v1293_v33  ;;  %v1273_v62 = vmul.f32 %v1242_v2, %v3084_v36  ;;  %vm1352_vm1 = vweird.f32 %v2079_v1 }
 0x217   : > { %vm1353_vm3 = vmor %vm1351_vm2, %vm1352_vm1 }
 0x218   : > { %v1347_v27 = vmul.f32 %v2079_v1, %v1346_v11  ;;  %v1289_v18 = vadd.f32 1e-05, %v1273_v62 }
 0x21a   : > { %v1348_v37 = vmul.f32 0.5, %v1347_v27  ;;  %2080 = vrsqrt.f32 %v1289_v18  ;;  %v1258_v28 = vpop.xlane.xlu0 %1257  ;;  %vm1311_vm5 = vweird.f32 %v1289_v18 }
 0x21b   : > { %v1281_v46 = vmul.f32 %v1258_v28, %v3084_v36 }
 0x21c   : > { %v1349_v61 = vsub.f32 1.5, %v1348_v37 }
 0x21d   : > { %v1266_v5 = vpop.xlane.xlu1 %1265  ;;  %v1297_v54 = vadd.f32 1e-05, %v1281_v46 }
 0x21e   : > { %v1350_v32 = vmul.f32 %v2079_v1, %v1349_v61  ;;  %v1285_v13 = vmul.f32 %v1266_v5, %v3084_v36 }
 0x21f   : > { %2082 = vrsqrt.f32 %v1297_v54  ;;  %vm1391_vm8 = vweird.f32 %v1297_v54 }
 0x220   : > { %v2081_v41 = vpop.eup %2080  ;;  %v1354_v48 = vsel %vm1353_vm3, %v2079_v1, %v1350_v32  ;;  %v1301_v38 = vadd.f32 1e-05, %v1285_v13 }
 0x221   : > { %v1469_v53 = vmul.f32 %v1354_v48, %v3088_v56  ;;  %v1306_v39 = vmul.f32 %v2081_v41, %v1289_v18  ;;  %vm1312_vm4 = vweird.f32 %v2081_v41 }
 0x222   : > { %2084 = vrsqrt.f32 %v1301_v38  ;;  %vm1313_vm6 = vmor %vm1311_vm5, %vm1312_vm4  ;;  %vm1431_vm11 = vweird.f32 %v1301_v38 }
 0x223   : > { %v1489_v14 = vmul.f32 %v3189_v17, %v1469_v53  ;;  %v1307_v57 = vmul.f32 %v2081_v41, %v1306_v39 }
 0x225   : > { %v2083_v7 = vpop.eup %2082  ;;  %v1509_v44 = vadd.f32 %v3194_v16, %v1489_v14  ;;  %v1308_v63 = vmul.f32 0.5, %v1307_v57 }
 0x226   : > { %v1386_v31 = vmul.f32 %v2083_v7, %v1297_v54  ;;  %vm1392_vm7 = vweird.f32 %v2083_v7 }
 0x227   : > { %1525 = vst [vmem:[#allocation2 + $0x50] sm:$0xff] %v1509_v44  ;;  %v1309_v55 = vsub.f32 1.5, %v1308_v63  ;;  %v1252_v40 = vpop.xlane.xlu0 %1251  ;;  %vm1393_vm10 = vmor %vm1391_vm8, %vm1392_vm7 }
 0x228   : > { %v2085_v29 = vpop.eup %2084  ;;  %v1387_v10 = vmul.f32 %v2083_v7, %v1386_v31  ;;  %v1278_v22 = vmul.f32 %v1252_v40, %v3084_v36 }
 0x229   : > { %v1310_v4 = vmul.f32 %v2081_v41, %v1309_v55  ;;  %v1426_v8 = vmul.f32 %v2085_v29, %v1301_v38  ;;  %vm1432_vm9 = vweird.f32 %v2085_v29 }
 0x22a   : > { %v1388_v56 = vmul.f32 0.5, %v1387_v10  ;;  %v1294_v33 = vadd.f32 1e-05, %v1278_v22  ;;  %vm1433_vm12 = vmor %vm1431_vm11, %vm1432_vm9 }
 0x22b   : > { %v1314_v12 = vsel %vm1313_vm6, %v2081_v41, %v1310_v4  ;;  %v1427_v3 = vmul.f32 %v2085_v29, %v1426_v8 }
 0x22c   : > { %v1465_v59 = vmul.f32 %v1314_v12, %v3094_v34  ;;  %v1389_v50 = vsub.f32 1.5, %v1388_v56  ;;  %2086 = vrsqrt.f32 %v1294_v33  ;;  %vm1361_vm14 = vweird.f32 %v1294_v33 }
 0x22d   : > { %v1428_v6 = vmul.f32 0.5, %v1427_v3 }
 0x22e   : > { %v1485_v42 = vmul.f32 %v3189_v17, %v1465_v59  ;;  %v1390_v20 = vmul.f32 %v2083_v7, %v1389_v50 }
 0x22f   : > { %v1429_v24 = vsub.f32 1.5, %v1428_v6 }
 0x230   : > { %v1505_v0 = vadd.f32 %v3194_v16, %v1485_v42  ;;  %v1394_v15 = vsel %vm1393_vm10, %v2083_v7, %v1390_v20 }
 0x231   : > { %v1430_v21 = vmul.f32 %v2085_v29, %v1429_v24  ;;  %v1473_v34 = vmul.f32 %v1394_v15, %v3100_v26 }
 0x232   : > { %v1244_v23 = vpop.xlane.xlu2 %1243  ;;  %1521 = vst [vmem:[#allocation2 + $0x30] sm:$0xff] %v1505_v0  ;;  %v2087_v28 = vpop.eup %2086 }
 0x233   : > { %v1274_v1 = vmul.f32 %v1244_v23, %v3084_v36  ;;  %v1434_v2 = vsel %vm1433_vm12, %v2085_v29, %v1430_v21  ;;  %v1493_v11 = vmul.f32 %v3189_v17, %v1473_v34  ;;  %v1356_v46 = vmul.f32 %v2087_v28, %v1294_v33 }
 0x234   : > { %v1477_v62 = vmul.f32 %v1434_v2, %v3106_v43  ;;  %vm1362_vm13 = vweird.f32 %v2087_v28 }
 0x235   : > { %v1290_v27 = vadd.f32 1e-05, %v1274_v1  ;;  %v1513_v18 = vadd.f32 %v3194_v16, %v1493_v11  ;;  %v1357_v5 = vmul.f32 %v2087_v28, %v1356_v46  ;;  %vm1363_vm0 = vmor %vm1361_vm14, %vm1362_vm13 }
 0x236   : > { %v1497_v37 = vmul.f32 %v3189_v17, %v1477_v62 }
 0x237   : > { %2088 = vrsqrt.f32 %v1290_v27  ;;  %1529 = vst [vmem:[#allocation2 + $0x40] sm:$0xff] %v1513_v18  ;;  %v1358_v32 = vmul.f32 0.5, %v1357_v5  ;;  %vm1321_vm1 = vweird.f32 %v1290_v27 }
 0x238   : > { %v1517_v26 = vadd.f32 %v3194_v16, %v1497_v37 }
 0x239   : > { %v1359_v41 = vsub.f32 1.5, %v1358_v32 }
 0x23a   : > { %1533 = vst [vmem:[#allocation2 + $0x60] sm:$0xff] %v1517_v26 }
 0x23b   : > { %v1246_v48 = vpop.xlane.xlu0 %1245  ;;  %v1360_v38 = vmul.f32 %v2087_v28, %v1359_v41 }
 0x23c   : > { %v1275_v53 = vmul.f32 %v1246_v48, %v3084_v36 }
 0x23d   : > { %v2089_v61 = vpop.eup %2088  ;;  %v1364_v14 = vsel %vm1363_vm0, %v2087_v28, %v1360_v38 }
 0x23e   : > { %v1316_v54 = vmul.f32 %v2089_v61, %v1290_v27  ;;  %vm1322_vm15 = vweird.f32 %v2089_v61  ;;  %v1291_v7 = vadd.f32 1e-05, %v1275_v53  ;;  %v1470_v63 = vmul.f32 %v1364_v14, %v3112_v35 }
 0x23f   : > { %vm1323_vm2 = vmor %vm1321_vm1, %vm1322_vm15 }
 0x240   : > { %v1317_v13 = vmul.f32 %v2089_v61, %v1316_v54  ;;  %2090 = vrsqrt.f32 %v1291_v7  ;;  %v1490_v29 = vmul.f32 %v3189_v17, %v1470_v63  ;;  %vm1331_vm4 = vweird.f32 %v1291_v7 }
 0x242   : > { %v1318_v43 = vmul.f32 0.5, %v1317_v13  ;;  %v1510_v8 = vadd.f32 %v3194_v16, %v1490_v29 }
 0x244   : > { %v1319_v39 = vsub.f32 1.5, %v1318_v43  ;;  %1526 = vst [vmem:[#allocation2 + $0x68] sm:$0xff] %v1510_v8 }
 0x245   : > { %v1260_v57 = vpop.xlane.xlu1 %1259 }
 0x246   : > { %v1320_v44 = vmul.f32 %v2089_v61, %v1319_v39  ;;  %v1282_v31 = vmul.f32 %v1260_v57, %v3084_v36  ;;  %v2091_v12 = vpop.eup %2090  ;;  %v1264_v59 = vpop.xlane.xlu0 %1263 }
 0x247   : > { %v1326_v35 = vmul.f32 %v2091_v12, %v1291_v7  ;;  %v1284_v50 = vmul.f32 %v1264_v59, %v3084_v36  ;;  %vm1332_vm3 = vweird.f32 %v2091_v12 }
 0x248   : > { %v1324_v55 = vsel %vm1323_vm2, %v2089_v61, %v1320_v44  ;;  %v1298_v10 = vadd.f32 1e-05, %v1282_v31  ;;  %vm1333_vm6 = vmor %vm1331_vm4, %vm1332_vm3 }
 0x249   : > { %v1466_v4 = vmul.f32 %v1324_v55, %v3118_v60  ;;  %v1327_v42 = vmul.f32 %v2091_v12, %v1326_v35  ;;  %v1300_v22 = vadd.f32 1e-05, %v1284_v50 }
 0x24a   : > { %2092 = vrsqrt.f32 %v1298_v10  ;;  %vm1401_vm7 = vweird.f32 %v1298_v10 }
 0x24b   : > { %v1486_v56 = vmul.f32 %v3189_v17, %v1466_v4  ;;  %v1328_v0 = vmul.f32 0.5, %v1327_v42  ;;  %2094 = vrsqrt.f32 %v1300_v22  ;;  %vm1421_vm11 = vweird.f32 %v1300_v22 }
 0x24d   : > { %v1506_v3 = vadd.f32 %v3194_v16, %v1486_v56  ;;  %v1329_v23 = vsub.f32 1.5, %v1328_v0 }
 0x24f   : > { %1522 = vst [vmem:[#allocation2] sm:$0xff] %v1506_v3  ;;  %v1330_v2 = vmul.f32 %v2091_v12, %v1329_v23 }
 0x250   : > { %v2093_v6 = vpop.eup %2092  ;;  %v1262_v20 = vpop.xlane.xlu2 %1261 }
 0x251   : > { %v1396_v40 = vmul.f32 %v2093_v6, %v1298_v10  ;;  %v1283_v60 = vmul.f32 %v1262_v20, %v3084_v36  ;;  %v1254_v24 = vpop.xlane.xlu1 %1253  ;;  %vm1402_vm5 = vweird.f32 %v2093_v6  ;;  %v1334_v62 = vsel %vm1333_vm6, %v2091_v12, %v1330_v2  ;;  %v2095_v27 = vpop.eup %2094 }
 0x252   : > { %v1279_v15 = vmul.f32 %v1254_v24, %v3084_v36  ;;  %v1467_v37 = vmul.f32 %v1334_v62, %v3124_v52  ;;  %vm1403_vm8 = vmor %vm1401_vm7, %vm1402_vm5  ;;  %v1416_v26 = vmul.f32 %v2095_v27, %v1300_v22  ;;  %vm1422_vm9 = vweird.f32 %v2095_v27 }
 0x253   : > { %v1397_v21 = vmul.f32 %v2093_v6, %v1396_v40  ;;  %v1299_v34 = vadd.f32 1e-05, %v1283_v60  ;;  %vm1423_vm13 = vmor %vm1421_vm11, %vm1422_vm9 }
 0x254   : > { %v1295_v33 = vadd.f32 1e-05, %v1279_v15  ;;  %v1487_v61 = vmul.f32 %v3189_v17, %v1467_v37  ;;  %v1417_v13 = vmul.f32 %v2095_v27, %v1416_v26 }
 0x255   : > { %v1398_v1 = vmul.f32 0.5, %v1397_v21  ;;  %2096 = vrsqrt.f32 %v1299_v34  ;;  %vm1411_vm14 = vweird.f32 %v1299_v34 }
 0x256   : > { %2098 = vrsqrt.f32 %v1295_v33  ;;  %v1507_v41 = vadd.f32 %v3194_v16, %v1487_v61  ;;  %v1418_v53 = vmul.f32 0.5, %v1417_v13  ;;  %vm1371_vm0 = vweird.f32 %v1295_v33 }
 0x257   : > { %v1399_v11 = vsub.f32 1.5, %v1398_v1 }
 0x258   : > { %1523 = vst [vmem:[#allocation2 + $0x58] sm:$0xff] %v1507_v41  ;;  %v1419_v57 = vsub.f32 1.5, %v1418_v53 }
 0x259   : > { %v1400_v18 = vmul.f32 %v2093_v6, %v1399_v11 }
 0x25a   : > { %v1420_v31 = vmul.f32 %v2095_v27, %v1419_v57 }
 0x25b   : > { %v2097_v28 = vpop.eup %2096  ;;  %v1404_v46 = vsel %vm1403_vm8, %v2093_v6, %v1400_v18 }
 0x25c   : > { %v2099_v5 = vpop.eup %2098  ;;  %v1474_v54 = vmul.f32 %v1404_v46, %v3131_v25  ;;  %v1406_v32 = vmul.f32 %v2097_v28, %v1299_v34  ;;  %vm1412_vm10 = vweird.f32 %v2097_v28  ;;  %v1424_v8 = vsel %vm1423_vm13, %v2095_v27, %v1420_v31 }
 0x25d   : > { %v1366_v43 = vmul.f32 %v2099_v5, %v1295_v33  ;;  %vm1372_vm12 = vweird.f32 %v2099_v5  ;;  %vm1413_vm15 = vmor %vm1411_vm14, %vm1412_vm10  ;;  %v1476_v3 = vmul.f32 %v1424_v8, %v3134_v51 }
 0x25e   : > { %v1494_v48 = vmul.f32 %v3189_v17, %v1474_v54  ;;  %v1407_v38 = vmul.f32 %v2097_v28, %v1406_v32  ;;  %vm1373_vm1 = vmor %vm1371_vm0, %vm1372_vm12 }
 0x25f   : > { %v1367_v52 = vmul.f32 %v2099_v5, %v1366_v43  ;;  %v1270_v7 = vpop.xlane.xlu0 %1269  ;;  %v1496_v42 = vmul.f32 %v3189_v17, %v1476_v3 }
 0x260   : > { %v1514_v39 = vadd.f32 %v3194_v16, %v1494_v48  ;;  %v1408_v14 = vmul.f32 0.5, %v1407_v38  ;;  %v1287_v25 = vmul.f32 %v1270_v7, %v3084_v36 }
 0x261   : > { %v1368_v44 = vmul.f32 0.5, %v1367_v52  ;;  %v1516_v60 = vadd.f32 %v3194_v16, %v1496_v42 }
 0x262   : > { %1530 = vst [vmem:[#allocation2 + $0x20] sm:$0xff] %v1514_v39  ;;  %v1409_v63 = vsub.f32 1.5, %v1408_v14  ;;  %v1303_v10 = vadd.f32 1e-05, %v1287_v25 }
 0x263   : > { %v1369_v55 = vsub.f32 1.5, %v1368_v44  ;;  %v1248_v29 = vpop.xlane.xlu1 %1247  ;;  %1532 = vst [vmem:[#allocation2 + $0x38] sm:$0xff] %v1516_v60 }
 0x264   : > { %v1410_v4 = vmul.f32 %v2097_v28, %v1409_v63  ;;  %v1276_v56 = vmul.f32 %v1248_v29, %v3084_v36  ;;  %2100 = vrsqrt.f32 %v1303_v10  ;;  %vm1451_vm3 = vweird.f32 %v1303_v10 }
 0x265   : > { %v1370_v12 = vmul.f32 %v2099_v5, %v1369_v55 }
 0x266   : > { %v1414_v35 = vsel %vm1413_vm15, %v2097_v28, %v1410_v4  ;;  %v1292_v59 = vadd.f32 1e-05, %v1276_v56 }
 0x267   : > { %v1475_v50 = vmul.f32 %v1414_v35, %v3143_v58  ;;  %v1374_v6 = vsel %vm1373_vm1, %v2099_v5, %v1370_v12 }
 0x268   : > { %v1471_v20 = vmul.f32 %v1374_v6, %v3146_v19  ;;  %2102 = vrsqrt.f32 %v1292_v59  ;;  %vm1341_vm6 = vweird.f32 %v1292_v59 }
 0x269   : > { %v1495_v40 = vmul.f32 %v3189_v17, %v1475_v50 }
 0x26a   : > { %v1491_v24 = vmul.f32 %v3189_v17, %v1471_v20  ;;  %v2101_v22 = vpop.eup %2100 }
 0x26b   : > { %v1515_v51 = vadd.f32 %v3194_v16, %v1495_v40  ;;  %v1272_v0 = vpop.xlane.xlu1 %1271  ;;  %v1446_v58 = vmul.f32 %v2101_v22, %v1303_v10  ;;  %vm1452_vm2 = vweird.f32 %v2101_v22 }
 0x26c   : > { %v1511_v15 = vadd.f32 %v3194_v16, %v1491_v24  ;;  %v1288_v21 = vmul.f32 %v1272_v0, %v3084_v36  ;;  %vm1453_vm5 = vmor %vm1451_vm3, %vm1452_vm2 }
 0x26d   : > { %1531 = vst [vmem:[#allocation2 + $0x10] sm:$0xff] %v1515_v51  ;;  %v1447_v19 = vmul.f32 %v2101_v22, %v1446_v58 }
 0x26e   : > { %v2103_v34 = vpop.eup %2102  ;;  %1527 = vst [vmem:[#allocation2 + $0x8] sm:$0xff] %v1511_v15  ;;  %v1304_v23 = vadd.f32 1e-05, %v1288_v21 }
 0x26f   : > { %v1336_v33 = vmul.f32 %v2103_v34, %v1292_v59  ;;  %v1448_v1 = vmul.f32 0.5, %v1447_v19  ;;  %vm1342_vm4 = vweird.f32 %v2103_v34 }
 0x270   : > { %v1256_v2 = vpop.xlane.xlu2 %1255  ;;  %2104 = vrsqrt.f32 %v1304_v23  ;;  %vm1343_vm7 = vmor %vm1341_vm6, %vm1342_vm4  ;;  %vm1461_vm9 = vweird.f32 %v1304_v23 }
 0x271   : > { %v1337_v11 = vmul.f32 %v2103_v34, %v1336_v33  ;;  %v1280_v62 = vmul.f32 %v1256_v2, %v3084_v36  ;;  %v1449_v27 = vsub.f32 1.5, %v1448_v1 }
 0x273   : > { %v1338_v18 = vmul.f32 0.5, %v1337_v11  ;;  %v1296_v37 = vadd.f32 1e-05, %v1280_v62  ;;  %v1450_v26 = vmul.f32 %v2101_v22, %v1449_v27 }
 0x275   : > { %v1339_v28 = vsub.f32 1.5, %v1338_v18  ;;  %2106 = vrsqrt.f32 %v1296_v37  ;;  %v1454_v61 = vsel %vm1453_vm5, %v2101_v22, %v1450_v26  ;;  %vm1381_vm12 = vweird.f32 %v1296_v37 }
 0x276   : > { %v2105_v46 = vpop.eup %2104  ;;  %v1479_v54 = vmul.f32 %v1454_v61, %v3154_v45 }
 0x277   : > { %v1340_v5 = vmul.f32 %v2103_v34, %v1339_v28  ;;  %v1456_v32 = vmul.f32 %v2105_v46, %v1304_v23  ;;  %vm1462_vm8 = vweird.f32 %v2105_v46 }
 0x278   : > { %v1268_v13 = vpop.xlane.xlu2 %1267  ;;  %v1499_v43 = vmul.f32 %v3189_v17, %v1479_v54  ;;  %vm1463_vm10 = vmor %vm1461_vm9, %vm1462_vm8 }
 0x279   : > { %v1344_v41 = vsel %vm1343_vm7, %v2103_v34, %v1340_v5  ;;  %v1457_v48 = vmul.f32 %v2105_v46, %v1456_v32  ;;  %v1286_v38 = vmul.f32 %v1268_v13, %v3084_v36 }
 0x27a   : > { %v1468_v53 = vmul.f32 %v1344_v41, %v3160_v30  ;;  %v1519_v39 = vadd.f32 %v3194_v16, %v1499_v43 }
 0x27b   : > { %v2107_v52 = vpop.eup %2106  ;;  %v1458_v14 = vmul.f32 0.5, %v1457_v48  ;;  %v1302_v57 = vadd.f32 1e-05, %v1286_v38 }
 0x27c   : > { %v1488_v7 = vmul.f32 %v3189_v17, %v1468_v53  ;;  %v1376_v44 = vmul.f32 %v2107_v52, %v1296_v37  ;;  %1535 = vst [vmem:[#allocation2 + $0x78] sm:$0xff] %v1519_v39  ;;  %vm1382_vm11 = vweird.f32 %v2107_v52 }
 0x27d   : > { %v1459_v45 = vsub.f32 1.5, %v1458_v14  ;;  %2108 = vrsqrt.f32 %v1302_v57  ;;  %vm1383_vm13 = vmor %vm1381_vm12, %vm1382_vm11  ;;  %vm1441_vm15 = vweird.f32 %v1302_v57 }
 0x27e   : > { %v1508_v25 = vadd.f32 %v3194_v16, %v1488_v7  ;;  %v1377_v63 = vmul.f32 %v2107_v52, %v1376_v44 }
 0x27f   : > { %v1460_v31 = vmul.f32 %v2105_v46, %v1459_v45 }
 0x280   : > { %1524 = vst [vmem:[#allocation2 + $0x18] sm:$0xff] %v1508_v25  ;;  %v1378_v36 = vmul.f32 0.5, %v1377_v63 }
 0x281   : > { %v1464_v30 = vsel %vm1463_vm10, %v2105_v46, %v1460_v31 }
 0x282   : > { %v1379_v55 = vsub.f32 1.5, %v1378_v36  ;;  %v1480_v29 = vmul.f32 %v1464_v30, %v3166_v47 }
 0x283   : > { %v2109_v10 = vpop.eup %2108 }
 0x284   : > { %v1380_v4 = vmul.f32 %v2107_v52, %v1379_v55  ;;  %v1500_v8 = vmul.f32 %v3189_v17, %v1480_v29  ;;  %v1436_v56 = vmul.f32 %v2109_v10, %v1302_v57  ;;  %vm1442_vm14 = vweird.f32 %v2109_v10 }
 0x285   : > { %vm1443_vm0 = vmor %vm1441_vm15, %vm1442_vm14 }
 0x286   : > { %v1384_v12 = vsel %vm1383_vm13, %v2107_v52, %v1380_v4  ;;  %v1520_v3 = vadd.f32 %v3194_v16, %v1500_v8  ;;  %v1437_v35 = vmul.f32 %v2109_v10, %v1436_v56 }
 0x287   : > { %v1472_v59 = vmul.f32 %v1384_v12, %v3172_v49 }
 0x288   : > { %1536 = vst [vmem:[#allocation2 + $0x28] sm:$0xff] %v1520_v3  ;;  %v1438_v50 = vmul.f32 0.5, %v1437_v35 }
 0x289   : > { %v1492_v6 = vmul.f32 %v3189_v17, %v1472_v59 }
 0x28a   : > { %v1439_v42 = vsub.f32 1.5, %v1438_v50 }
 0x28b   : > { %v1512_v47 = vadd.f32 %v3194_v16, %v1492_v6 }
 0x28c   : > { %v1440_v20 = vmul.f32 %v2109_v10, %v1439_v42 }
 0x28d   : > { %1528 = vst [vmem:[#allocation2 + $0x48] sm:$0xff] %v1512_v47 }
 0x28e   : > { %v1444_v40 = vsel %vm1443_vm0, %v2109_v10, %v1440_v20 }
 0x28f   : > { %v1478_v60 = vmul.f32 %v1444_v40, %v3178_v9 }
 0x291   : > { %v1498_v24 = vmul.f32 %v3189_v17, %v1478_v60 }
 0x293   : > { %v1518_v22 = vadd.f32 %v3194_v16, %v1498_v24 }
 0x295   : > { %1534 = vst [vmem:[#allocation2 + $0x70] sm:$0xff] %v1518_v22 }
 0x296 PF: > { %v1568_v49 = vld [vmem:[%s2302_s17 + $0x78] sm:$0xff]  ;;  %v1567_v51 = vld [vmem:[%s2302_s17 + $0x70] sm:$0xff]  ;;  %v1566_v0 = vld [vmem:[%s2302_s17 + $0x68] sm:$0xff]  ;;  %s1883_s10 = sshll.u32 (%p2287_p9), %s2183_s27, 3 }
 0x297   : > { %1935 = vmatpush.msra.mxu2 %v1568_v49  ;;  %1936 = vmatpush.msra.mxu3 %v1568_v49  ;;  %v1565_v9 = vld [vmem:[%s2302_s17 + $0x60] sm:$0xff]  ;;  %v1564_v17 = vld [vmem:[%s2302_s17 + $0x58] sm:$0xff]  ;;  %v1563_v16 = vld [vmem:[%s2302_s17 + $0x50] sm:$0xff]  ;;  %s1665_s18 = scalar_lea.vmem (%p2287_p9), %s3340_s7, %s1883_s10 }
 0x298   : > { %1573 = vmatpush.msra.mxu0 %v1568_v49  ;;  %1934 = vmatpush.msra.mxu1 %v1568_v49  ;;  %v1562_v15 = vld [vmem:[%s2302_s17 + $0x48] sm:$0xff]  ;;  %v1561_v58 = vld [vmem:[%s2302_s17 + $0x40] sm:$0xff]  ;;  %v1560_v21 = vld [vmem:[%s2302_s17 + $0x38] sm:$0xff] }
 0x299   : > { %1938 = vmatpush.msra.mxu2 %v1567_v51  ;;  %1939 = vmatpush.msra.mxu3 %v1567_v51  ;;  %v1559_v34 = vld [vmem:[%s2302_s17 + $0x30] sm:$0xff]  ;;  %v1558_v19 = vld [vmem:[%s2302_s17 + $0x28] sm:$0xff]  ;;  %v1557_v23 = vld [vmem:[%s2302_s17 + $0x20] sm:$0xff] }
 0x29a   : > { %1574 = vmatpush.msra.mxu0 %v1567_v51  ;;  %1937 = vmatpush.msra.mxu1 %v1567_v51  ;;  %v1556_v33 = vld [vmem:[%s2302_s17 + $0x18] sm:$0xff]  ;;  %v1555_v1 = vld [vmem:[%s2302_s17 + $0x10] sm:$0xff]  ;;  %v1554_v2 = vld [vmem:[%s2302_s17 + $0x8] sm:$0xff] }
 0x29b   : > { %1941 = vmatpush.msra.mxu2 %v1566_v0  ;;  %1942 = vmatpush.msra.mxu3 %v1566_v0  ;;  %v1553_v11 = vld [vmem:[%s2302_s17] sm:$0xff]  ;;  %v1537_v18 = vld [vmem:[#allocation2 + $0x30] sm:$0xff]  ;;  %v1542_v61 = vld [vmem:[#allocation2 + $0x68] sm:$0xff] }
 0x29c   : > { %1575 = vmatpush.msra.mxu0 %v1566_v0  ;;  %1940 = vmatpush.msra.mxu1 %v1566_v0  ;;  %v1545_v62 = vld [vmem:[#allocation2 + $0x40] sm:$0xff]  ;;  %v1541_v37 = vld [vmem:[#allocation2 + $0x50] sm:$0xff]  ;;  %v1551_v54 = vld [vmem:[#allocation2 + $0x78] sm:$0xff] }
 0x29d   : > { %1944 = vmatpush.msra.mxu2 %v1565_v9  ;;  %1945 = vmatpush.msra.mxu3 %v1565_v9  ;;  %v1549_v27 = vld [vmem:[#allocation2 + $0x60] sm:$0xff]  ;;  %v1550_v28 = vld [vmem:[#allocation2 + $0x70] sm:$0xff]  ;;  %v1539_v32 = vld [vmem:[#allocation2 + $0x58] sm:$0xff] }
 0x29e   : > { %1576 = vmatpush.msra.mxu0 %v1565_v9  ;;  %1943 = vmatpush.msra.mxu1 %v1565_v9  ;;  %v1546_v26 = vld [vmem:[#allocation2 + $0x20] sm:$0xff]  ;;  %v1547_v5 = vld [vmem:[#allocation2 + $0x10] sm:$0xff]  ;;  %v1543_v13 = vld [vmem:[#allocation2 + $0x8] sm:$0xff] }
 0x29f   : > { %1947 = vmatpush.msra.mxu2 %v1564_v17  ;;  %1948 = vmatpush.msra.mxu3 %v1564_v17  ;;  %v1538_v46 = vld [vmem:[#allocation2] sm:$0xff]  ;;  %v1548_v41 = vld [vmem:[#allocation2 + $0x38] sm:$0xff]  ;;  %v1552_v43 = vld [vmem:[#allocation2 + $0x28] sm:$0xff] }
 0x2a0   : > { %1577 = vmatpush.msra.mxu0 %v1564_v17  ;;  %1946 = vmatpush.msra.mxu1 %v1564_v17  ;;  %v1540_v48 = vld [vmem:[#allocation2 + $0x18] sm:$0xff]  ;;  %v1544_v38 = vld [vmem:[#allocation2 + $0x48] sm:$0xff]  ;;  %v2110_v53 = vld [vmem:[%s343_s21] ss:$0 sm:$0xff] }
 0x2a1   : > { %1950 = vmatpush.msra.mxu2 %v1563_v16  ;;  %1951 = vmatpush.msra.mxu3 %v1563_v16 }
 0x2a2   : > { %1578 = vmatpush.msra.mxu0 %v1563_v16  ;;  %1949 = vmatpush.msra.mxu1 %v1563_v16 }
 0x2a3   : > { %1953 = vmatpush.msra.mxu2 %v1562_v15  ;;  %1954 = vmatpush.msra.mxu3 %v1562_v15 }
 0x2a4   : > { %1579 = vmatpush.msra.mxu0 %v1562_v15  ;;  %1952 = vmatpush.msra.mxu1 %v1562_v15 }
 0x2a5   : > { %1956 = vmatpush.msra.mxu2 %v1561_v58  ;;  %1957 = vmatpush.msra.mxu3 %v1561_v58 }
 0x2a6   : > { %1580 = vmatpush.msra.mxu0 %v1561_v58  ;;  %1955 = vmatpush.msra.mxu1 %v1561_v58 }
 0x2a7   : > { %1959 = vmatpush.msra.mxu2 %v1560_v21  ;;  %1960 = vmatpush.msra.mxu3 %v1560_v21 }
 0x2a8   : > { %1581 = vmatpush.msra.mxu0 %v1560_v21  ;;  %1958 = vmatpush.msra.mxu1 %v1560_v21 }
 0x2a9   : > { %1962 = vmatpush.msra.mxu2 %v1559_v34  ;;  %1963 = vmatpush.msra.mxu3 %v1559_v34 }
 0x2aa   : > { %1582 = vmatpush.msra.mxu0 %v1559_v34  ;;  %1961 = vmatpush.msra.mxu1 %v1559_v34 }
 0x2ab   : > { %1965 = vmatpush.msra.mxu2 %v1558_v19  ;;  %1966 = vmatpush.msra.mxu3 %v1558_v19 }
 0x2ac   : > { %1583 = vmatpush.msra.mxu0 %v1558_v19  ;;  %1964 = vmatpush.msra.mxu1 %v1558_v19 }
 0x2ad   : > { %1968 = vmatpush.msra.mxu2 %v1557_v23  ;;  %1969 = vmatpush.msra.mxu3 %v1557_v23 }
 0x2ae   : > { %1584 = vmatpush.msra.mxu0 %v1557_v23  ;;  %1967 = vmatpush.msra.mxu1 %v1557_v23 }
 0x2af   : > { %1971 = vmatpush.msra.mxu2 %v1556_v33  ;;  %1972 = vmatpush.msra.mxu3 %v1556_v33 }
 0x2b0   : > { %1585 = vmatpush.msra.mxu0 %v1556_v33  ;;  %1970 = vmatpush.msra.mxu1 %v1556_v33 }
 0x2b1   : > { %1974 = vmatpush.msra.mxu2 %v1555_v1  ;;  %1975 = vmatpush.msra.mxu3 %v1555_v1 }
 0x2b2   : > { %1586 = vmatpush.msra.mxu0 %v1555_v1  ;;  %1973 = vmatpush.msra.mxu1 %v1555_v1 }
 0x2b3   : > { %1977 = vmatpush.msra.mxu2 %v1554_v2  ;;  %1978 = vmatpush.msra.mxu3 %v1554_v2 }
 0x2b4   : > { %1587 = vmatpush.msra.mxu0 %v1554_v2  ;;  %1976 = vmatpush.msra.mxu1 %v1554_v2 }
 0x2b5   : > { %1980 = vmatpush.msra.mxu2 %v1553_v11  ;;  %1981 = vmatpush.msra.mxu3 %v1553_v11 }
 0x2b6   : > { %1613 = vmatmul.f32.vlgmr.msra.gmra.mxu2 %v1545_v62  ;;  %1625 = vmatmul.f32.vlgmr.msra.gmra.mxu3 %v1549_v27 }
 0x2b7   : > { %1588 = vmatpush.msra.mxu0 %v1553_v11  ;;  %1979 = vmatpush.msra.mxu1 %v1553_v11 }
 0x2b8   : > { %1589 = vmatmul.f32.vlgmr.msra.gmra.mxu0 %v1537_v18  ;;  %1601 = vmatmul.f32.vlgmr.msra.gmra.mxu1 %v1541_v37 }
 0x2be   : > { %1616 = vmatmul.f32.gmra.mxu2 %v1546_v26  ;;  %1628 = vmatmul.f32.gmra.mxu3 %v1550_v28 }
 0x2c0   : > { %1592 = vmatmul.f32.gmra.mxu0 %v1538_v46  ;;  %1604 = vmatmul.f32.gmra.mxu1 %v1542_v61 }
 0x2c6   : > { %1619 = vmatmul.f32.gmra.mxu2 %v1547_v5  ;;  %1631 = vmatmul.f32.gmra.mxu3 %v1551_v54 }
 0x2c8   : > { %1595 = vmatmul.f32.gmra.mxu0 %v1539_v32  ;;  %1607 = vmatmul.f32.gmra.mxu1 %v1543_v13 }
 0x2ce   : > { %1622 = vmatmul.f32.gmra.mxu2 %v1548_v41  ;;  %1634 = vmatmul.f32.gmra.mxu3 %v1552_v43 }
 0x2d0   : > { %1598 = vmatmul.f32.gmra.mxu0 %v1540_v48  ;;  %1610 = vmatmul.f32.gmra.mxu1 %v1544_v38 }
 0x335   : > { %v1590_v52 = vpop.f32.mrf.mxu0  ;;  %v1602_v39 = vpop.f32.mrf.mxu1 }
 0x336   : > { %v1591_v14 = vadd.f32 %v2110_v53, %v1590_v52  ;;  %v1603_v57 = vadd.f32 %v2110_v53, %v1602_v39 }
 0x338   : > { %1638 = vst [vmem:[%s2316_s22] sm:$0xff] %v1591_v14 }
 0x339   : > { %1642 = vst [vmem:[%s2316_s22 + $0x20] sm:$0xff] %v1603_v57  ;;  %v1614_v7 = vpop.f32.mrf.mxu2  ;;  %v1626_v44 = vpop.f32.mrf.mxu3 }
 0x33a   : > { %v1615_v45 = vadd.f32 %v2110_v53, %v1614_v7  ;;  %v1627_v25 = vadd.f32 %v2110_v53, %v1626_v44 }
 0x33c   : > { %1646 = vst [vmem:[%s2316_s22 + $0x40] sm:$0xff] %v1615_v45 }
 0x33d   : > { %1650 = vst [vmem:[%s2316_s22 + $0x60] sm:$0xff] %v1627_v25  ;;  %v1593_v63 = vpop.f32.mrf.mxu0  ;;  %v1605_v31 = vpop.f32.mrf.mxu1 }
 0x33e   : > { %v1594_v36 = vadd.f32 %v2110_v53, %v1593_v63  ;;  %v1606_v30 = vadd.f32 %v2110_v53, %v1605_v31 }
 0x33f   : > { %v1724_v51 = vld [vmem:[%s2316_s22] sm:$0xff] (%p2287_p9) }
 0x340   : > { %1639 = vst [vmem:[%s2316_s22 + $0x8] sm:$0xff] %v1594_v36  ;;  %v1732_v16 = vld [vmem:[%s2316_s22 + $0x20] sm:$0xff] (%p2287_p9) }
 0x341   : > { %1643 = vst [vmem:[%s2316_s22 + $0x28] sm:$0xff] %v1606_v30  ;;  %v1617_v55 = vpop.f32.mrf.mxu2  ;;  %v1629_v29 = vpop.f32.mrf.mxu3 }
 0x342   : > { %v1618_v10 = vadd.f32 %v2110_v53, %v1617_v55  ;;  %v1630_v4 = vadd.f32 %v2110_v53, %v1629_v29  ;;  %1725 = vst [vmem:[%s1665_s18] sm:$0xff] (%p2287_p9), %v1724_v51 }
 0x343   : > { %1733 = vst [vmem:[%s1665_s18 + $0x60] sm:$0xff] (%p2287_p9), %v1732_v16  ;;  %v1740_v34 = vld [vmem:[%s2316_s22 + $0x40] sm:$0xff] (%p2287_p9) }
 0x344   : > { %1647 = vst [vmem:[%s2316_s22 + $0x48] sm:$0xff] %v1618_v10  ;;  %v1748_v1 = vld [vmem:[%s2316_s22 + $0x60] sm:$0xff] (%p2287_p9) }
 0x345   : > { %1651 = vst [vmem:[%s2316_s22 + $0x68] sm:$0xff] %v1630_v4  ;;  %v1596_v8 = vpop.f32.mrf.mxu0  ;;  %v1608_v56 = vpop.f32.mrf.mxu1 }
 0x346   : > { %v1597_v12 = vadd.f32 %v2110_v53, %v1596_v8  ;;  %v1609_v3 = vadd.f32 %v2110_v53, %v1608_v56  ;;  %1741 = vst [vmem:[%s1665_s18 + $0xc0] sm:$0xff] (%p2287_p9), %v1740_v34 }
 0x347   : > { %v1726_v0 = vld [vmem:[%s2316_s22 + $0x8] sm:$0xff] (%p2287_p9)  ;;  %1749 = vst [vmem:[%s1665_s18 + $0x120] sm:$0xff] (%p2287_p9), %v1748_v1 }
 0x348   : > { %1640 = vst [vmem:[%s2316_s22 + $0x10] sm:$0xff] %v1597_v12  ;;  %v1734_v15 = vld [vmem:[%s2316_s22 + $0x28] sm:$0xff] (%p2287_p9) }
 0x349   : > { %1644 = vst [vmem:[%s2316_s22 + $0x30] sm:$0xff] %v1609_v3  ;;  %v1620_v35 = vpop.f32.mrf.mxu2  ;;  %v1632_v59 = vpop.f32.mrf.mxu3 }
 0x34a   : > { %v1621_v50 = vadd.f32 %v2110_v53, %v1620_v35  ;;  %v1633_v6 = vadd.f32 %v2110_v53, %v1632_v59  ;;  %1727 = vst [vmem:[%s1665_s18 + $0x18] sm:$0xff] (%p2287_p9), %v1726_v0 }
 0x34b   : > { %1735 = vst [vmem:[%s1665_s18 + $0x78] sm:$0xff] (%p2287_p9), %v1734_v15  ;;  %v1742_v19 = vld [vmem:[%s2316_s22 + $0x48] sm:$0xff] (%p2287_p9) }
 0x34c   : > { %1648 = vst [vmem:[%s2316_s22 + $0x50] sm:$0xff] %v1621_v50  ;;  %v1750_v2 = vld [vmem:[%s2316_s22 + $0x68] sm:$0xff] (%p2287_p9) }
 0x34d   : > { %1652 = vst [vmem:[%s2316_s22 + $0x70] sm:$0xff] %v1633_v6  ;;  %v1599_v42 = vpop.f32.mrf.mxu0  ;;  %v1611_v47 = vpop.f32.mrf.mxu1 }
 0x34e   : > { %v1600_v20 = vadd.f32 %v2110_v53, %v1599_v42  ;;  %v1612_v40 = vadd.f32 %v2110_v53, %v1611_v47  ;;  %1743 = vst [vmem:[%s1665_s18 + $0xd8] sm:$0xff] (%p2287_p9), %v1742_v19 }
 0x34f   : > { %v1728_v9 = vld [vmem:[%s2316_s22 + $0x10] sm:$0xff] (%p2287_p9)  ;;  %1751 = vst [vmem:[%s1665_s18 + $0x138] sm:$0xff] (%p2287_p9), %v1750_v2 }
 0x350   : > { %1641 = vst [vmem:[%s2316_s22 + $0x18] sm:$0xff] %v1600_v20  ;;  %v1736_v58 = vld [vmem:[%s2316_s22 + $0x30] sm:$0xff] (%p2287_p9) }
 0x351   : > { %1645 = vst [vmem:[%s2316_s22 + $0x38] sm:$0xff] %v1612_v40  ;;  %v1623_v60 = vpop.f32.mrf.mxu2  ;;  %v1635_v24 = vpop.f32.mrf.mxu3  ;;  %1660 = sbr.rel (!%p2287_p9) target bundleno = 862 (0x35e), region = 60 }
 0x352   : > { %v1624_v22 = vadd.f32 %v2110_v53, %v1623_v60  ;;  %v1636_v49 = vadd.f32 %v2110_v53, %v1635_v24  ;;  %1729 = vst [vmem:[%s1665_s18 + $0x30] sm:$0xff] (%p2287_p9), %v1728_v9 }
 0x353   : > { %1737 = vst [vmem:[%s1665_s18 + $0x90] sm:$0xff] (%p2287_p9), %v1736_v58  ;;  %v1744_v23 = vld [vmem:[%s2316_s22 + $0x50] sm:$0xff] (%p2287_p9) }
 0x354   : > { %1649 = vst [vmem:[%s2316_s22 + $0x58] sm:$0xff] %v1624_v22  ;;  %v1752_v11 = vld [vmem:[%s2316_s22 + $0x70] sm:$0xff] (%p2287_p9) }
 0x355   : > { %1653 = vst [vmem:[%s2316_s22 + $0x78] sm:$0xff] %v1636_v49 }
 0x356   : > { %1745 = vst [vmem:[%s1665_s18 + $0xf0] sm:$0xff] %v1744_v23 }
 0x357   : > { %v1730_v17 = vld [vmem:[%s2316_s22 + $0x18] sm:$0xff]  ;;  %1753 = vst [vmem:[%s1665_s18 + $0x150] sm:$0xff] %v1752_v11 }
 0x358   : > { %1731 = vst [vmem:[%s1665_s18 + $0x48] sm:$0xff] %v1730_v17  ;;  %v1738_v21 = vld [vmem:[%s2316_s22 + $0x38] sm:$0xff] }
 0x359   : > { %1739 = vst [vmem:[%s1665_s18 + $0xa8] sm:$0xff] %v1738_v21 }
 0x35b   : > { %v1746_v33 = vld [vmem:[%s2316_s22 + $0x58] sm:$0xff] }
 0x35c   : > { %1747 = vst [vmem:[%s1665_s18 + $0x108] sm:$0xff] %v1746_v33  ;;  %v1754_v62 = vld [vmem:[%s2316_s22 + $0x78] sm:$0xff] }
 0x35d   : > { %1755 = vst [vmem:[%s1665_s18 + $0x168] sm:$0xff] %v1754_v62 }
 0x35e PF: > { %s20_s29 = sadd.s32 1, %s2191_s29   ;;  %s3391_s24 = smov %s2175_s25 }
 0x35f   : > { %p17_p3 = scmp.ge.s32.totalorder %s20_s29, 5   ;;  %s3392_s25 = smov %s2179_s26 }
 0x360   : > { %s3393_s26 = smov %s2285_s13  ;;  %s3394_s27 = smov %s2187_s28 }
 0x361   : > { %s3395_s28 = smov %s3397_s8  ;;  %19 = sbr.rel (!%p17_p3) target bundleno = 4 (0x4), region = 136 }
 0x366   :  { %1771 = vsyncpa [#allocation4], 1 }
 0x367   :  { %1773 = vsyncpa [#allocation4 + $0x1], 1 }

</bundles_post_ra>
